<compile_context>
chip_gen: v7x
topology: tpu7x:2x2x1
jax: 0.10.0
libtpu: 0.0.40
codegen_flags: <defaults>
</compile_context>

<pallas_src>
import functools

import jax
import jax.numpy as jnp
from jax import lax
from jax.experimental import pallas as pl
from jax.experimental.pallas import tpu as pltpu

_NT = 4  # number of attention "tokens" (size of the torch.cat dim=1)


def _make_attention_kernel(din, dout, sub):
    gout = _NT * dout            # width of one projection group (K / Q / V)
    hp = lax.Precision.HIGHEST

    def kernel(x0_ref, x1_ref, x2_ref, x3_ref, w_ref, b_ref, sel_ref, o_ref):
        tile = o_ref.shape[0]
        n_sub = tile // sub
        w = w_ref[...]            # (4*din, 3*4*dout) block-diag fused [K|Q|V]
        bias = b_ref[...]         # (1, 3*4*dout)     (Q-bias slice is zero)
        sel = sel_ref[...]        # (4*dout, 4)       0/1 group-sum selector

        def body(j, carry):
            row = pl.multiple_of(j * sub, sub)
            x_cat = jnp.concatenate(
                (x0_ref[pl.ds(row, sub), :], x1_ref[pl.ds(row, sub), :],
                 x2_ref[pl.ds(row, sub), :], x3_ref[pl.ds(row, sub), :]),
                axis=-1)                                        # (sub, 4*din)
            # Single fused MXU dot: all tokens' K|Q|V at once.
            proj = jnp.dot(x_cat, w, precision=hp,
                           preferred_element_type=jnp.float32) + bias
            k_cat = proj[:, 0 * gout:1 * gout]                   # (sub, 4*dout)
            q_cat = proj[:, 1 * gout:2 * gout]
            v_cat = proj[:, 2 * gout:3 * gout]

            # scores[t, s] = <k_t, q_s>, packed lane-dense as (sub, 16),
            # lane index = s*4 + t (softmax axis s spans the 4-lane groups).
            s_cols = []
            for s in range(_NT):
                q_s = q_cat[:, s * dout:(s + 1) * dout]
                q_rep = jnp.concatenate([q_s] * _NT, axis=-1)    # (sub, 4*dout)
                prod = q_rep * k_cat                             # full-lane VPU mul
                # per-group sums on the (idle) MXU: (sub, 4) over t
                s_cols.append(jnp.dot(prod, sel, precision=hp,
                                      preferred_element_type=jnp.float32))
            scores = jnp.concatenate(s_cols, axis=-1)            # (sub, 16)

            # Softmax over s, all lane-dense; exact reciprocal (correctness fix).
            m = s_cols[0]
            for s in range(1, _NT):
                m = jnp.maximum(m, s_cols[s])                    # (sub, 4)
            e = jnp.exp(scores - jnp.concatenate([m] * _NT, axis=-1))
            denom = e[:, 0:_NT]
            for s in range(1, _NT):
                denom = denom + e[:, s * _NT:(s + 1) * _NT]      # (sub, 4)
            inv = 1.0 / denom
            wgt = e * jnp.concatenate([inv] * _NT, axis=-1)      # (sub, 16)

            # out_t = sum_s wgt[:, s*4+t] * v_s ; packed lane-dense (sub, 4*dout).
            outs = []
            for t in range(_NT):
                acc = wgt[:, t:t + 1] * v_cat[:, 0:dout]
                for s in range(1, _NT):
                    c = s * _NT + t
                    acc = acc + wgt[:, c:c + 1] * v_cat[:, s * dout:(s + 1) * dout]
                outs.append(acc)
            o_ref[pl.ds(row, sub), :] = jnp.concatenate(
                outs, axis=-1).astype(o_ref.dtype)
            return carry

        lax.fori_loop(0, n_sub, body, 0, unroll=True)

    return kernel


@functools.partial(jax.jit, static_argnames=("tile_b", "sub_rows"))
def attention_pallas(x0, x1, x2, x3, wk, bk, wq, bq, wv, bv, *,
                     tile_b=2048, sub_rows=256):
    """x*: (B, Din) token inputs in torch.cat order; w*: (Dout, Din); b*: (Dout,).

    Returns the packed lane-dense output (B, 4*Dout); token t lives in lanes
    [t*Dout, (t+1)*Dout).
    """
    B, din = x0.shape
    dout = wk.shape[0]
    dtype = x0.dtype
    f32 = jnp.float32

    # Block-diagonal fused projection weight (4*din, 3*4*dout) = [K | Q | V]
    # column groups; token t occupies rows t*din:(t+1)*din and columns
    # t*dout:(t+1)*dout of each group.
    eye = jnp.eye(_NT, dtype=f32)
    w_big = jnp.concatenate(
        [jnp.kron(eye, wk.T.astype(f32)),
         jnp.kron(eye, wq.T.astype(f32)),
         jnp.kron(eye, wv.T.astype(f32))], axis=1)
    # Fused bias; Q bias cancels exactly inside the softmax, so it is dropped.
    b_big = jnp.concatenate(
        [jnp.tile(bk.astype(f32), _NT),
         jnp.zeros((_NT * dout,), f32),
         jnp.tile(bv.astype(f32), _NT)]).reshape(1, 3 * _NT * dout)
    # 0/1 selector summing each dout-lane group: (4*dout, 4).
    sel = jnp.repeat(eye, dout, axis=0)

    # Tile selection: big tiles amortize per-step overhead (multiple of 8);
    # clamp so the "parallel" grid keeps >= 2 steps (both v7x TensorCores busy).
    tile = max(8, (tile_b // 8) * 8)
    if B >= 16:
        tile = min(tile, max(8, ((B // 2) // 8) * 8))
    elif B >= 8:
        tile = min(tile, (B // 8) * 8)
    else:
        tile = B
    sub = max(8, (sub_rows // 8) * 8)
    if sub > tile or tile % sub != 0:
        sub = tile

    grid = (pl.cdiv(B, tile),)   # ragged tail block: row-wise math, masked writes
    kernel = _make_attention_kernel(din, dout, sub)

    x_spec = pl.BlockSpec((tile, din), lambda i: (i, 0))
    w_spec = pl.BlockSpec((_NT * din, 3 * _NT * dout), lambda i: (0, 0))
    b_spec = pl.BlockSpec((1, 3 * _NT * dout), lambda i: (0, 0))
    sel_spec = pl.BlockSpec((_NT * dout, _NT), lambda i: (0, 0))
    o_spec = pl.BlockSpec((tile, _NT * dout), lambda i: (i, 0))

    return pl.pallas_call(
        kernel,
        out_shape=jax.ShapeDtypeStruct((B, _NT * dout), dtype),
        grid_spec=pltpu.PrefetchScalarGridSpec(
            num_scalar_prefetch=0,
            grid=grid,
            in_specs=[x_spec, x_spec, x_spec, x_spec, w_spec, b_spec, sel_spec],
            out_specs=o_spec,
        ),
        compiler_params=pltpu.CompilerParams(
            dimension_semantics=("parallel",)),
    )(x0, x1, x2, x3, w_big, b_big, sel)


def attention_forward(x, params, *, tile_b=2048):
    """x = (gru_gcn_out, gcn_gru_out, gru_out, gcn_out), each (b, n, D)."""
    gru_gcn_out, gcn_gru_out, gru_out, gcn_out = x
    b, n, f_out = gru_gcn_out.shape
    _, _, hidden_size = gcn_gru_out.shape
    assert f_out == hidden_size, "concat requires equal feature dims"

    # Free metadata reshapes; token order matches torch.cat:
    # [gru_gcn_out, gcn_gru_out, gcn_out, gru_out].
    x0 = gru_gcn_out.reshape(-1, f_out)
    x1 = gcn_gru_out.reshape(-1, hidden_size)
    x2 = gcn_out.reshape(-1, f_out)
    x3 = gru_out.reshape(-1, hidden_size)

    wk, bk, wq, bq, wv, bv = params
    dout = wk.shape[0]
    packed = attention_pallas(
        x0, x1, x2, x3, wk, bk, wq, bq, wv, bv, tile_b=tile_b)
    # Per-token views of the packed lane-dense output = att_out[:, 0..3, :].
    # (Downstream consumers can also take `packed` directly to avoid the split.)
    return tuple(packed[:, t * dout:(t + 1) * dout] for t in range(_NT))


def _reference(att_input, wk, bk, wq, bq, wv, bv):
    hp = lax.Precision.HIGHEST
    k = jnp.einsum("bte,oe->bto", att_input, wk, precision=hp) + bk
    q = jnp.einsum("bte,oe->bto", att_input, wq, precision=hp) + bq
    v = jnp.einsum("bte,oe->bto", att_input, wv, precision=hp) + bv
    s = jax.nn.softmax(jnp.einsum("bte,bse->bts", k, q, precision=hp), axis=-1)
    return jnp.einsum("bts,bse->bte", s, v, precision=hp)


if __name__ == "__main__":
    b, n = 2, 8            # B = b * n = 16 -> tile 8 -> 2 parallel grid steps
    att_input_size = 32
    att_out_size = 32

    key = jax.random.PRNGKey(0)
    keys = jax.random.split(key, 10)

    # Deterministic nn.Linear-style init: U(-1/sqrt(fan_in), 1/sqrt(fan_in)).
    bound = 1.0 / (att_input_size ** 0.5)
    wk = jax.random.uniform(keys[0], (att_out_size, att_input_size),
                            jnp.float32, -bound, bound)
    bk = jax.random.uniform(keys[1], (att_out_size,), jnp.float32, -bound, bound)
    wq = jax.random.uniform(keys[2], (att_out_size, att_input_size),
                            jnp.float32, -bound, bound)
    bq = jax.random.uniform(keys[3], (att_out_size,), jnp.float32, -bound, bound)
    wv = jax.random.uniform(keys[4], (att_out_size, att_input_size),
                            jnp.float32, -bound, bound)
    bv = jax.random.uniform(keys[5], (att_out_size,), jnp.float32, -bound, bound)
    params = (wk, bk, wq, bq, wv, bv)

    gru_gcn_out = jax.random.normal(keys[6], (b, n, att_input_size), jnp.float32)
    gcn_gru_out = jax.random.normal(keys[7], (b, n, att_input_size), jnp.float32)
    gru_out = jax.random.normal(keys[8], (b, n, att_input_size), jnp.float32)
    gcn_out = jax.random.normal(keys[9], (b, n, att_input_size), jnp.float32)
    x = (gru_gcn_out, gcn_gru_out, gru_out, gcn_out)

    outs = attention_forward(x, params)
    outs = jax.block_until_ready(outs)

    # Cross-check against a pure-JAX reference of the PyTorch module.
    att_input = jnp.stack(
        [gru_gcn_out.reshape(-1, att_input_size),
         gcn_gru_out.reshape(-1, att_input_size),
         gcn_out.reshape(-1, att_input_size),
         gru_out.reshape(-1, att_input_size)], axis=1)
    ref = _reference(att_input, wk, bk, wq, bq, wv, bv)
    ref_outs = (ref[:, 0, :], ref[:, 1, :], ref[:, 2, :], ref[:, 3, :])
    for got, want in zip(outs, ref_outs):
        err = float(jnp.max(jnp.abs(got - want)))
        assert jnp.allclose(got, want, atol=2e-4, rtol=2e-4), err

    print("KERNEL_OK")
</pallas_src>

<mosaic_0001>
module attributes {stable_mosaic.version = 11 : i64} {
  func.func @kernel(%arg0: i32, %arg1: memref<8x32xf32, #tpu.memory_space<vmem>>, %arg2: memref<8x32xf32, #tpu.memory_space<vmem>>, %arg3: memref<8x32xf32, #tpu.memory_space<vmem>>, %arg4: memref<8x32xf32, #tpu.memory_space<vmem>>, %arg5: memref<128x384xf32, #tpu.memory_space<vmem>>, %arg6: memref<1x384xf32, #tpu.memory_space<vmem>>, %arg7: memref<128x4xf32, #tpu.memory_space<vmem>>, %arg8: memref<8x128xf32, #tpu.memory_space<vmem>>) attributes {dimension_semantics = [#tpu.dimension_semantics<parallel>], iteration_bounds = array<i64: 2>, scalar_prefetch = 0 : i64, scratch_operands = 0 : i64, tpu.core_type = #tpu.core_type<tc>, window_params = [{transform_indices = @transform_0, window_bounds = array<i64: 8, 32>}, {transform_indices = @transform_1, window_bounds = array<i64: 8, 32>}, {transform_indices = @transform_2, window_bounds = array<i64: 8, 32>}, {transform_indices = @transform_3, window_bounds = array<i64: 8, 32>}, {pipeline_mode = #tpu.pipeline_mode<synchronous>, transform_indices = @transform_4, window_bounds = array<i64: 128, 384>}, {pipeline_mode = #tpu.pipeline_mode<synchronous>, transform_indices = @transform_5, window_bounds = array<i64: 1, 384>}, {pipeline_mode = #tpu.pipeline_mode<synchronous>, transform_indices = @transform_6, window_bounds = array<i64: 128, 4>}, {transform_indices = @transform_7, window_bounds = array<i64: 8, 128>}]} {
    %c0 = arith.constant 0 : index
    %c0_0 = arith.constant 0 : index
    %0 = vector.load %arg5[%c0, %c0_0] : memref<128x384xf32, #tpu.memory_space<vmem>>, vector<128x384xf32>
    %c0_1 = arith.constant 0 : index
    %c0_2 = arith.constant 0 : index
    %1 = vector.load %arg6[%c0_1, %c0_2] : memref<1x384xf32, #tpu.memory_space<vmem>>, vector<1x384xf32>
    %c0_3 = arith.constant 0 : index
    %c0_4 = arith.constant 0 : index
    %2 = vector.load %arg7[%c0_3, %c0_4] : memref<128x4xf32, #tpu.memory_space<vmem>>, vector<128x4xf32>
    %c0_i32 = arith.constant 0 : i32
    %c8_i32 = arith.constant 8 : i32
    %3 = arith.muli %c0_i32, %c8_i32 : i32
    %4 = tpu.assume_multiple %3, 8 : i32
    %5 = arith.index_cast %4 : i32 to index
    %c0_5 = arith.constant 0 : index
    %6 = vector.load %arg1[%5, %c0_5] : memref<8x32xf32, #tpu.memory_space<vmem>>, vector<8x32xf32>
    %7 = arith.index_cast %4 : i32 to index
    %c0_6 = arith.constant 0 : index
    %8 = vector.load %arg2[%7, %c0_6] : memref<8x32xf32, #tpu.memory_space<vmem>>, vector<8x32xf32>
    %9 = arith.index_cast %4 : i32 to index
    %c0_7 = arith.constant 0 : index
    %10 = vector.load %arg3[%9, %c0_7] : memref<8x32xf32, #tpu.memory_space<vmem>>, vector<8x32xf32>
    %11 = arith.index_cast %4 : i32 to index
    %c0_8 = arith.constant 0 : index
    %12 = vector.load %arg4[%11, %c0_8] : memref<8x32xf32, #tpu.memory_space<vmem>>, vector<8x32xf32>
    %13 = tpu.concatenate %6, %8, %10, %12 in 1 : vector<8x32xf32>, vector<8x32xf32>, vector<8x32xf32>, vector<8x32xf32> -> vector<8x128xf32>
    %cst = arith.constant dense<0.000000e+00> : vector<8x384xf32>
    %14 = tpu.matmul %13, %0, %cst {dimension_numbers = #tpu.dot_dimension_numbers<[1], [0], [0], [1], [0, 0, 1, 1], [], []>, precision = #tpu.contract_precision<fp32>} : vector<8x128xf32>, vector<128x384xf32>, vector<8x384xf32> -> vector<8x384xf32>
    %15 = vector.broadcast %1 : vector<1x384xf32> to vector<8x384xf32>
    %16 = arith.addf %14, %15 : vector<8x384xf32>
    %17 = vector.extract_strided_slice %16 {offsets = [0, 0], sizes = [8, 128], strides = [1, 1]} : vector<8x384xf32> to vector<8x128xf32>
    %18 = vector.extract_strided_slice %16 {offsets = [0, 128], sizes = [8, 128], strides = [1, 1]} : vector<8x384xf32> to vector<8x128xf32>
    %19 = vector.extract_strided_slice %16 {offsets = [0, 256], sizes = [8, 128], strides = [1, 1]} : vector<8x384xf32> to vector<8x128xf32>
    %20 = vector.extract_strided_slice %18 {offsets = [0, 0], sizes = [8, 32], strides = [1, 1]} : vector<8x128xf32> to vector<8x32xf32>
    %21 = tpu.concatenate %20, %20, %20, %20 in 1 : vector<8x32xf32>, vector<8x32xf32>, vector<8x32xf32>, vector<8x32xf32> -> vector<8x128xf32>
    %22 = arith.mulf %21, %17 : vector<8x128xf32>
    %cst_9 = arith.constant dense<0.000000e+00> : vector<8x4xf32>
    %23 = tpu.matmul %22, %2, %cst_9 {dimension_numbers = #tpu.dot_dimension_numbers<[1], [0], [0], [1], [0, 0, 1, 1], [], []>, precision = #tpu.contract_precision<fp32>} : vector<8x128xf32>, vector<128x4xf32>, vector<8x4xf32> -> vector<8x4xf32>
    %24 = vector.extract_strided_slice %18 {offsets = [0, 32], sizes = [8, 32], strides = [1, 1]} : vector<8x128xf32> to vector<8x32xf32>
    %25 = tpu.concatenate %24, %24, %24, %24 in 1 : vector<8x32xf32>, vector<8x32xf32>, vector<8x32xf32>, vector<8x32xf32> -> vector<8x128xf32>
    %26 = arith.mulf %25, %17 : vector<8x128xf32>
    %cst_10 = arith.constant dense<0.000000e+00> : vector<8x4xf32>
    %27 = tpu.matmul %26, %2, %cst_10 {dimension_numbers = #tpu.dot_dimension_numbers<[1], [0], [0], [1], [0, 0, 1, 1], [], []>, precision = #tpu.contract_precision<fp32>} : vector<8x128xf32>, vector<128x4xf32>, vector<8x4xf32> -> vector<8x4xf32>
    %28 = vector.extract_strided_slice %18 {offsets = [0, 64], sizes = [8, 32], strides = [1, 1]} : vector<8x128xf32> to vector<8x32xf32>
    %29 = tpu.concatenate %28, %28, %28, %28 in 1 : vector<8x32xf32>, vector<8x32xf32>, vector<8x32xf32>, vector<8x32xf32> -> vector<8x128xf32>
    %30 = arith.mulf %29, %17 : vector<8x128xf32>
    %cst_11 = arith.constant dense<0.000000e+00> : vector<8x4xf32>
    %31 = tpu.matmul %30, %2, %cst_11 {dimension_numbers = #tpu.dot_dimension_numbers<[1], [0], [0], [1], [0, 0, 1, 1], [], []>, precision = #tpu.contract_precision<fp32>} : vector<8x128xf32>, vector<128x4xf32>, vector<8x4xf32> -> vector<8x4xf32>
    %32 = vector.extract_strided_slice %18 {offsets = [0, 96], sizes = [8, 32], strides = [1, 1]} : vector<8x128xf32> to vector<8x32xf32>
    %33 = tpu.concatenate %32, %32, %32, %32 in 1 : vector<8x32xf32>, vector<8x32xf32>, vector<8x32xf32>, vector<8x32xf32> -> vector<8x128xf32>
    %34 = arith.mulf %33, %17 : vector<8x128xf32>
    %cst_12 = arith.constant dense<0.000000e+00> : vector<8x4xf32>
    %35 = tpu.matmul %34, %2, %cst_12 {dimension_numbers = #tpu.dot_dimension_numbers<[1], [0], [0], [1], [0, 0, 1, 1], [], []>, precision = #tpu.contract_precision<fp32>} : vector<8x128xf32>, vector<128x4xf32>, vector<8x4xf32> -> vector<8x4xf32>
    %36 = tpu.concatenate %23, %27, %31, %35 in 1 : vector<8x4xf32>, vector<8x4xf32>, vector<8x4xf32>, vector<8x4xf32> -> vector<8x16xf32>
    %37 = arith.maximumf %23, %27 : vector<8x4xf32>
    %38 = arith.maximumf %37, %31 : vector<8x4xf32>
    %39 = arith.maximumf %38, %35 : vector<8x4xf32>
    %40 = tpu.concatenate %39, %39, %39, %39 in 1 : vector<8x4xf32>, vector<8x4xf32>, vector<8x4xf32>, vector<8x4xf32> -> vector<8x16xf32>
    %41 = arith.subf %36, %40 : vector<8x16xf32>
    %42 = math.exp %41 : vector<8x16xf32>
    %43 = vector.extract_strided_slice %42 {offsets = [0, 0], sizes = [8, 4], strides = [1, 1]} : vector<8x16xf32> to vector<8x4xf32>
    %44 = vector.extract_strided_slice %42 {offsets = [0, 4], sizes = [8, 4], strides = [1, 1]} : vector<8x16xf32> to vector<8x4xf32>
    %45 = arith.addf %43, %44 : vector<8x4xf32>
    %46 = vector.extract_strided_slice %42 {offsets = [0, 8], sizes = [8, 4], strides = [1, 1]} : vector<8x16xf32> to vector<8x4xf32>
    %47 = arith.addf %45, %46 : vector<8x4xf32>
    %48 = vector.extract_strided_slice %42 {offsets = [0, 12], sizes = [8, 4], strides = [1, 1]} : vector<8x16xf32> to vector<8x4xf32>
    %49 = arith.addf %47, %48 : vector<8x4xf32>
    %cst_13 = arith.constant 1.000000e+00 : f32
    %50 = vector.broadcast %cst_13 : f32 to vector<8x4xf32>
    %51 = arith.divf %50, %49 : vector<8x4xf32>
    %52 = tpu.concatenate %51, %51, %51, %51 in 1 : vector<8x4xf32>, vector<8x4xf32>, vector<8x4xf32>, vector<8x4xf32> -> vector<8x16xf32>
    %53 = arith.mulf %42, %52 : vector<8x16xf32>
    %54 = vector.extract_strided_slice %53 {offsets = [0, 0], sizes = [8, 1], strides = [1, 1]} : vector<8x16xf32> to vector<8x1xf32>
    %55 = vector.extract_strided_slice %19 {offsets = [0, 0], sizes = [8, 32], strides = [1, 1]} : vector<8x128xf32> to vector<8x32xf32>
    %56 = vector.broadcast %54 : vector<8x1xf32> to vector<8x32xf32>
    %57 = arith.mulf %56, %55 : vector<8x32xf32>
    %58 = vector.extract_strided_slice %53 {offsets = [0, 4], sizes = [8, 1], strides = [1, 1]} : vector<8x16xf32> to vector<8x1xf32>
    %59 = vector.extract_strided_slice %19 {offsets = [0, 32], sizes = [8, 32], strides = [1, 1]} : vector<8x128xf32> to vector<8x32xf32>
    %60 = vector.broadcast %58 : vector<8x1xf32> to vector<8x32xf32>
    %61 = arith.mulf %60, %59 : vector<8x32xf32>
    %62 = arith.addf %57, %61 : vector<8x32xf32>
    %63 = vector.extract_strided_slice %53 {offsets = [0, 8], sizes = [8, 1], strides = [1, 1]} : vector<8x16xf32> to vector<8x1xf32>
    %64 = vector.extract_strided_slice %19 {offsets = [0, 64], sizes = [8, 32], strides = [1, 1]} : vector<8x128xf32> to vector<8x32xf32>
    %65 = vector.broadcast %63 : vector<8x1xf32> to vector<8x32xf32>
    %66 = arith.mulf %65, %64 : vector<8x32xf32>
    %67 = arith.addf %62, %66 : vector<8x32xf32>
    %68 = vector.extract_strided_slice %53 {offsets = [0, 12], sizes = [8, 1], strides = [1, 1]} : vector<8x16xf32> to vector<8x1xf32>
    %69 = vector.extract_strided_slice %19 {offsets = [0, 96], sizes = [8, 32], strides = [1, 1]} : vector<8x128xf32> to vector<8x32xf32>
    %70 = vector.broadcast %68 : vector<8x1xf32> to vector<8x32xf32>
    %71 = arith.mulf %70, %69 : vector<8x32xf32>
    %72 = arith.addf %67, %71 : vector<8x32xf32>
    %73 = vector.extract_strided_slice %53 {offsets = [0, 1], sizes = [8, 1], strides = [1, 1]} : vector<8x16xf32> to vector<8x1xf32>
    %74 = vector.extract_strided_slice %19 {offsets = [0, 0], sizes = [8, 32], strides = [1, 1]} : vector<8x128xf32> to vector<8x32xf32>
    %75 = vector.broadcast %73 : vector<8x1xf32> to vector<8x32xf32>
    %76 = arith.mulf %75, %74 : vector<8x32xf32>
    %77 = vector.extract_strided_slice %53 {offsets = [0, 5], sizes = [8, 1], strides = [1, 1]} : vector<8x16xf32> to vector<8x1xf32>
    %78 = vector.extract_strided_slice %19 {offsets = [0, 32], sizes = [8, 32], strides = [1, 1]} : vector<8x128xf32> to vector<8x32xf32>
    %79 = vector.broadcast %77 : vector<8x1xf32> to vector<8x32xf32>
    %80 = arith.mulf %79, %78 : vector<8x32xf32>
    %81 = arith.addf %76, %80 : vector<8x32xf32>
    %82 = vector.extract_strided_slice %53 {offsets = [0, 9], sizes = [8, 1], strides = [1, 1]} : vector<8x16xf32> to vector<8x1xf32>
    %83 = vector.extract_strided_slice %19 {offsets = [0, 64], sizes = [8, 32], strides = [1, 1]} : vector<8x128xf32> to vector<8x32xf32>
    %84 = vector.broadcast %82 : vector<8x1xf32> to vector<8x32xf32>
    %85 = arith.mulf %84, %83 : vector<8x32xf32>
    %86 = arith.addf %81, %85 : vector<8x32xf32>
    %87 = vector.extract_strided_slice %53 {offsets = [0, 13], sizes = [8, 1], strides = [1, 1]} : vector<8x16xf32> to vector<8x1xf32>
    %88 = vector.extract_strided_slice %19 {offsets = [0, 96], sizes = [8, 32], strides = [1, 1]} : vector<8x128xf32> to vector<8x32xf32>
    %89 = vector.broadcast %87 : vector<8x1xf32> to vector<8x32xf32>
    %90 = arith.mulf %89, %88 : vector<8x32xf32>
    %91 = arith.addf %86, %90 : vector<8x32xf32>
    %92 = vector.extract_strided_slice %53 {offsets = [0, 2], sizes = [8, 1], strides = [1, 1]} : vector<8x16xf32> to vector<8x1xf32>
    %93 = vector.extract_strided_slice %19 {offsets = [0, 0], sizes = [8, 32], strides = [1, 1]} : vector<8x128xf32> to vector<8x32xf32>
    %94 = vector.broadcast %92 : vector<8x1xf32> to vector<8x32xf32>
    %95 = arith.mulf %94, %93 : vector<8x32xf32>
    %96 = vector.extract_strided_slice %53 {offsets = [0, 6], sizes = [8, 1], strides = [1, 1]} : vector<8x16xf32> to vector<8x1xf32>
    %97 = vector.extract_strided_slice %19 {offsets = [0, 32], sizes = [8, 32], strides = [1, 1]} : vector<8x128xf32> to vector<8x32xf32>
    %98 = vector.broadcast %96 : vector<8x1xf32> to vector<8x32xf32>
    %99 = arith.mulf %98, %97 : vector<8x32xf32>
    %100 = arith.addf %95, %99 : vector<8x32xf32>
    %101 = vector.extract_strided_slice %53 {offsets = [0, 10], sizes = [8, 1], strides = [1, 1]} : vector<8x16xf32> to vector<8x1xf32>
    %102 = vector.extract_strided_slice %19 {offsets = [0, 64], sizes = [8, 32], strides = [1, 1]} : vector<8x128xf32> to vector<8x32xf32>
    %103 = vector.broadcast %101 : vector<8x1xf32> to vector<8x32xf32>
    %104 = arith.mulf %103, %102 : vector<8x32xf32>
    %105 = arith.addf %100, %104 : vector<8x32xf32>
    %106 = vector.extract_strided_slice %53 {offsets = [0, 14], sizes = [8, 1], strides = [1, 1]} : vector<8x16xf32> to vector<8x1xf32>
    %107 = vector.extract_strided_slice %19 {offsets = [0, 96], sizes = [8, 32], strides = [1, 1]} : vector<8x128xf32> to vector<8x32xf32>
    %108 = vector.broadcast %106 : vector<8x1xf32> to vector<8x32xf32>
    %109 = arith.mulf %108, %107 : vector<8x32xf32>
    %110 = arith.addf %105, %109 : vector<8x32xf32>
    %111 = vector.extract_strided_slice %53 {offsets = [0, 3], sizes = [8, 1], strides = [1, 1]} : vector<8x16xf32> to vector<8x1xf32>
    %112 = vector.extract_strided_slice %19 {offsets = [0, 0], sizes = [8, 32], strides = [1, 1]} : vector<8x128xf32> to vector<8x32xf32>
    %113 = vector.broadcast %111 : vector<8x1xf32> to vector<8x32xf32>
    %114 = arith.mulf %113, %112 : vector<8x32xf32>
    %115 = vector.extract_strided_slice %53 {offsets = [0, 7], sizes = [8, 1], strides = [1, 1]} : vector<8x16xf32> to vector<8x1xf32>
    %116 = vector.extract_strided_slice %19 {offsets = [0, 32], sizes = [8, 32], strides = [1, 1]} : vector<8x128xf32> to vector<8x32xf32>
    %117 = vector.broadcast %115 : vector<8x1xf32> to vector<8x32xf32>
    %118 = arith.mulf %117, %116 : vector<8x32xf32>
    %119 = arith.addf %114, %118 : vector<8x32xf32>
    %120 = vector.extract_strided_slice %53 {offsets = [0, 11], sizes = [8, 1], strides = [1, 1]} : vector<8x16xf32> to vector<8x1xf32>
    %121 = vector.extract_strided_slice %19 {offsets = [0, 64], sizes = [8, 32], strides = [1, 1]} : vector<8x128xf32> to vector<8x32xf32>
    %122 = vector.broadcast %120 : vector<8x1xf32> to vector<8x32xf32>
    %123 = arith.mulf %122, %121 : vector<8x32xf32>
    %124 = arith.addf %119, %123 : vector<8x32xf32>
    %125 = vector.extract_strided_slice %53 {offsets = [0, 15], sizes = [8, 1], strides = [1, 1]} : vector<8x16xf32> to vector<8x1xf32>
    %126 = vector.extract_strided_slice %19 {offsets = [0, 96], sizes = [8, 32], strides = [1, 1]} : vector<8x128xf32> to vector<8x32xf32>
    %127 = vector.broadcast %125 : vector<8x1xf32> to vector<8x32xf32>
    %128 = arith.mulf %127, %126 : vector<8x32xf32>
    %129 = arith.addf %124, %128 : vector<8x32xf32>
    %130 = tpu.concatenate %72, %91, %110, %129 in 1 : vector<8x32xf32>, vector<8x32xf32>, vector<8x32xf32>, vector<8x32xf32> -> vector<8x128xf32>
    %131 = arith.index_cast %4 : i32 to index
    %c0_14 = arith.constant 0 : index
    %132 = vector.load %arg8[%131, %c0_14] : memref<8x128xf32, #tpu.memory_space<vmem>>, vector<8x128xf32>
    tpu.vector_store %arg8[%131, %c0_14], %130 {strides = array<i32>} : memref<8x128xf32, #tpu.memory_space<vmem>>, vector<8x128xf32>,
    %c1_i32 = arith.constant 1 : i32
    return
  }
  func.func @transform_0(%arg0: i32) -> (i32, i32) {
    %c0_i32 = arith.constant 0 : i32
    %c0_i32_0 = arith.constant 0 : i32
    return %arg0, %c0_i32 : i32, i32
  }
  func.func @transform_1(%arg0: i32) -> (i32, i32) {
    %c0_i32 = arith.constant 0 : i32
    %c0_i32_0 = arith.constant 0 : i32
    return %arg0, %c0_i32 : i32, i32
  }
  func.func @transform_2(%arg0: i32) -> (i32, i32) {
    %c0_i32 = arith.constant 0 : i32
    %c0_i32_0 = arith.constant 0 : i32
    return %arg0, %c0_i32 : i32, i32
  }
  func.func @transform_3(%arg0: i32) -> (i32, i32) {
    %c0_i32 = arith.constant 0 : i32
    %c0_i32_0 = arith.constant 0 : i32
    return %arg0, %c0_i32 : i32, i32
  }
  func.func @transform_4(%arg0: i32) -> (i32, i32) {
    %c0_i32 = arith.constant 0 : i32
    %c0_i32_0 = arith.constant 0 : i32
    %c0_i32_1 = arith.constant 0 : i32
    return %c0_i32, %c0_i32_0 : i32, i32
  }
  func.func @transform_5(%arg0: i32) -> (i32, i32) {
    %c0_i32 = arith.constant 0 : i32
    %c0_i32_0 = arith.constant 0 : i32
    %c0_i32_1 = arith.constant 0 : i32
    return %c0_i32, %c0_i32_0 : i32, i32
  }
  func.func @transform_6(%arg0: i32) -> (i32, i32) {
    %c0_i32 = arith.constant 0 : i32
    %c0_i32_0 = arith.constant 0 : i32
    %c0_i32_1 = arith.constant 0 : i32
    return %c0_i32, %c0_i32_0 : i32, i32
  }
  func.func @transform_7(%arg0: i32) -> (i32, i32) {
    %c0_i32 = arith.constant 0 : i32
    %c0_i32_0 = arith.constant 0 : i32
    return %arg0, %c0_i32 : i32, i32
  }
}

</mosaic_0001>

<bundles_post_ra>
// kernel: tile.13
= control target key start
LH: loop header
LB: loop body
LE: loop exit
PB: predicated region body
PF: predicated region fallthrough
CT: control target
= control target key end

     0   :  { %s22_s0 = inlined_call_operand.vmem [shape: f32[32], index: 0, kind: input, shape index: {}]   ;;  %s23_s1 = inlined_call_operand.vmem [shape: f32[4,32], index: 1, kind: output, shape index: {}]  }
   0x1   :  { %v4_v0 = vld [vmem:[%s22_s0] ss:$0 sm:$0xff] }
   0x2   :  { %5 = vst [vmem:[%s23_s1] sm:$0xf] %v4_v0 }

// kernel: tile.14
= control target key start
LH: loop header
LB: loop body
LE: loop exit
PB: predicated region body
PF: predicated region fallthrough
CT: control target
= control target key end

     0   :  { %vm7_vm0 = vcmask 261120   ;;  %s37_s8 = smov 32   ;;  %s38_s9 = smov 64   ;;  %vm13_vm1 = vcmask 1048320   ;;  %vm19_vm2 = vcmask 785920   ;;  %vm25_vm3 = vcmask 523520   ;;  %s55_s0 = inlined_call_operand.vmem [shape: f32[4,32], index: 0, kind: input, shape index: {}]   ;;  %s56_s1 = inlined_call_operand.vmem [shape: f32[128], index: 1, kind: output, shape index: {}]  }
   0x1   :  { %v4_v0 = vld [vmem:[%s55_s0] sm:$0xf]  ;;  %s36_s0 = smov 96  }
   0x2   :  { %5 = vst [vmem:[#allocation1] sm:$0xf] %v4_v0 }
   0x9   :  { %v10_v1 = vld [vmem:[#allocation1 + $0x3] sm:$0x1]   ;;  %v22_v2 = vld [vmem:[#allocation1 + $0x1] sm:$0x1]   ;;  %v6_v3 = vld [vmem:[#allocation1] sm:$0x1]  }
   0xa   :  { %11 = vrot.lane.b32.xlu0 %v10_v1, %s36_s0  ;;  %23 = vrot.lane.b32.xlu1 %v22_v2, %s37_s8  ;;  %v16_v4 = vld [vmem:[#allocation1 + $0x2] sm:$0x1]   ;;  %8 = vst.msk [vmem:[#allocation0] sm:$0x1] %vm7_vm0, %v6_v3  }
   0xe   :  { %17 = vrot.lane.b32.xlu0 %v16_v4, %s38_s9 }
  0x7c   :  { %v12_v5 = vpop.permute.xlu0 %11   ;;  %v24_v6 = vpop.permute.xlu1 %23  }
  0x7d   :  { %14 = vst.msk [vmem:[#allocation0] sm:$0x1] %vm13_vm1, %v12_v5  }
  0x80   :  { %v18_v7 = vpop.permute.xlu0 %17  }
  0x81   :  { %20 = vst.msk [vmem:[#allocation0] sm:$0x1] %vm19_vm2, %v18_v7  }
  0x82   :  { %26 = vst.msk [vmem:[#allocation0] sm:$0x1] %vm25_vm3, %v24_v6  }
  0x89   :  { %v30_v8 = vld [vmem:[#allocation0] sm:$0x1] }
  0x8a   :  { %32 = vst [vmem:[%s56_s1] sm:$0x1] %v30_v8 }

// kernel: attention_pallas.1
= control target key start
LH: loop header
LB: loop body
LE: loop exit
PB: predicated region body
PF: predicated region fallthrough
CT: control target
= control target key end

     0   :  { %12 = vsyncpa [#allocation3], 0  ;;  %s9631_s0 = inlined_call_operand.vmem [shape: f32[16,32], index: 0, kind: input, shape index: {}]   ;;  %s9632_s1 = inlined_call_operand.vmem [shape: f32[16,32], index: 1, kind: input, shape index: {}]   ;;  %s9633_s2 = inlined_call_operand.vmem [shape: f32[16,32], index: 2, kind: input, shape index: {}]   ;;  %s9634_s3 = inlined_call_operand.vmem [shape: f32[16,32], index: 3, kind: input, shape index: {}]   ;;  %s9635_s4 = inlined_call_operand.vmem [shape: f32[128,384], index: 4, kind: input, shape index: {}]   ;;  %s9636_s5 = inlined_call_operand.vmem [shape: f32[1,384], index: 5, kind: input, shape index: {}]   ;;  %s9637_s6 = inlined_call_operand.vmem [shape: f32[128,4], index: 6, kind: input, shape index: {}]   ;;  %s9638_s7 = inlined_call_operand.hbm [shape: f32[16,128], index: 7, kind: output, shape index: {}]  }
   0x1   :  { %14 = vsyncpa [#allocation3 + $0x1], 0  ;;  %s7616_s24 = smov 0   ;;  %s7618_s25 = smov 0  }
   0x2   :  { %s7620_s26 = smov 0   ;;  %s7622_s27 = smov 0  }
   0x3 LB: > { %s7637_s28 = sadd.s32 4294967295, %s7545_s27   ;;  %s4846_s29 = sadd.s32 4294967294, %s7545_s27   ;;  %s7545_s27 = sphi %s7622_s27, %s9983_s27   ;;  %s7541_s26 = sphi %s7620_s26, %s9982_s26   ;;  %s7537_s25 = sphi %s7618_s25, %s9981_s25   ;;  %s7533_s24 = sphi %s7616_s24, %s9980_s24  }
   0x4   : > { %s7641_s30 = sadd.s32 1, %s7545_s27   ;;  %s194_s8 = sadd.s32 1, %s7541_s26 }
   0x5   : > { %s191_s9 = ssub.s32 %s7545_s27, %s7641_s30  ;;  %p204_p0 = scmp.ne.s32.totalorder %s7541_s26, %s7537_s25 }
   0x6   : > { %p192_p1 = scmp.eq.s32.totalorder %s191_s9, 0  ;;  %p205_p2 = scmp.eq.s32.totalorder %s7637_s28, 1 }
   0x7   : > { %p210_p3 = scmp.ne.s32.totalorder %s7537_s25, %s7533_s24  ;;  %p211_p4 = scmp.eq.s32.totalorder %s4846_s29, 1 }
   0x8   : > { %s7652_s10 = scalar_select %p192_p1, %s7541_s26, %s194_s8  }
   0x9   : > { %p7654_p5 = por %p205_p2, %p204_p0  ;;  %p7658_p6 = por %p211_p4, %p210_p3 }
   0xa   : > { %p4849_p7 = scmp.ge.s32.totalorder %s7545_s27, 1  ;;  %p266_p8 = scmp.lt.s32.totalorder %s7545_s27, 3 }
   0xc   : > { %p267_p9 = pnand %p4849_p7, %p266_p8 }
   0xe   : > { %270 = sbr.rel (%p267_p9) target bundleno = 2029 (0x7ed), region = 48 }
  0x15   : > { %p309_p10 = scmp.lt.s32.totalorder %s7637_s28, 1  ;;  %v326_v0 = vld [vmem:[%s9635_s4 + $0x8] sm:$0xff]  ;;  %v7671_v1 = vld [vmem:[%s9635_s4 + $0x20] sm:$0xff]  ;;  %v9644_v5 = vmov 0.0|0.0   ;;  %v328_v6 = vld [vmem:[%s9635_s4 + $0x18] sm:$0xff]  ;;  %s7549_s23 = smov 96  }
  0x16   : > { %v325_v2 = vld [vmem:[%s9635_s4] sm:$0xff]  ;;  %v428_v3 = vand.u32 4294901760, %v326_v0  ;;  %v9639_v4 = vand.u32 4294901760, %v7671_v1  ;;  %6611 = vmatprep.subr.bf16.mxu1 %v9644_v5  ;;  %v434_v8 = vand.u32 4294901760, %v328_v6  ;;  %v327_v9 = vld [vmem:[%s9635_s4 + $0x10] sm:$0xff]  ;;  %v330_v10 = vld [vmem:[%s9635_s4 + $0x28] sm:$0xff] }
  0x17   : > { %v430_v7 = vand.u32 4294901760, %v325_v2  ;;  %s310_s21 = scalar_select %p309_p10, %s7637_s28, 1  ;;  %v332_v11 = vld [vmem:[%s9635_s4 + $0x38] sm:$0xff]  ;;  %v335_v15 = vld [vmem:[%s9635_s4 + $0x50] sm:$0xff]  ;;  %v334_v17 = vld [vmem:[%s9635_s4 + $0x48] sm:$0xff]  ;;  %v1284_v20 = vand.u32 4294901760, %v327_v9 }
  0x18   : > { %v7693_v12 = vpack.c.bf16 %v9639_v4, %v428_v3  ;;  %v7695_v13 = vsub.f32 %v326_v0, %v428_v3  ;;  %v331_v16 = vld [vmem:[%s9635_s4 + $0x30] sm:$0xff]  ;;  %v7712_v19 = vsub.f32 %v328_v6, %v434_v8  ;;  %v1287_v21 = vand.u32 4294901760, %v330_v10  ;;  %v333_v22 = vld [vmem:[%s9635_s4 + $0x40] sm:$0xff]  ;;  %v336_v23 = vld [vmem:[%s9635_s4 + $0x58] sm:$0xff]  ;;  %s7550_s18 = smov 64   ;;  %s7553_s9 = smov 4  }
  0x19   : > { %v7697_v14 = vsub.f32 %v325_v2, %v430_v7  ;;  %s7708_s20 = sshll.u32 %s310_s21, 3  ;;  %v7710_v18 = vpack.c.bf16 %v434_v8, %v430_v7  ;;  %v436_v24 = vand.u32 4294901760, %v332_v11  ;;  %v440_v25 = vand.u32 4294901760, %v335_v15  ;;  %v338_v28 = vld [vmem:[%s9635_s4 + $0x68] sm:$0xff]  ;;  %v341_v29 = vld [vmem:[%s9635_s4 + $0x80] sm:$0xff]  ;;  %v340_v36 = vld [vmem:[%s9635_s4 + $0x78] sm:$0xff] }
  0x1a   : > { %9766 = vst [vmem:[#allocation5_spill] sm:$0xff] %v7693_v12  ;;  %9769 = vst [vmem:[#allocation8_spill] sm:$0xff] %v7712_v19  ;;  %s316_s13 = scalar_lea.vmem %s9632_s1, %s7708_s20  ;;  %s320_s16 = scalar_lea.vmem %s9633_s2, %s7708_s20  ;;  %6420 = vmatprep.subr.bf16.mxu0 %v7693_v12  ;;  %v438_v26 = vand.u32 4294901760, %v331_v16  ;;  %v442_v27 = vand.u32 4294901760, %v334_v17  ;;  %v7740_v31 = vpack.c.bf16 %v1287_v21, %v1284_v20  ;;  %v7742_v32 = vsub.f32 %v327_v9, %v1284_v20  ;;  %v337_v35 = vld [vmem:[%s9635_s4 + $0x60] sm:$0xff]  ;;  %v339_v42 = vld [vmem:[%s9635_s4 + $0x70] sm:$0xff] }
  0x1b   : > { %9767 = vst [vmem:[#allocation6_spill] sm:$0xff] %v7697_v14  ;;  %9768 = vst [vmem:[#allocation7_spill] sm:$0xff] %v7710_v18  ;;  %v391_v30 = vld [vmem:[%s316_s13] sm:$0xff]  ;;  %s324_s8 = scalar_lea.vmem %s9634_s3, %s7708_s20  ;;  %6422 = vmatpush1.bf16.msra.mxu0 %v7710_v18  ;;  %v7744_v33 = vsub.f32 %v330_v10, %v1287_v21  ;;  %v1290_v34 = vand.u32 4294901760, %v333_v22  ;;  %s7548_s13 = smov 32   ;;  %v7753_v38 = vpack.c.bf16 %v440_v25, %v436_v24  ;;  %v342_v43 = vld [vmem:[%s9635_s4 + $0x88] sm:$0xff] }
  0x1c   : > { %9770 = vst [vmem:[#allocation9_spill] sm:$0xff] %v7740_v31  ;;  %9771 = vst [vmem:[#allocation10_spill] sm:$0xff] %v7742_v32  ;;  %395 = vrot.lane.b32.xlu0 %v391_v30, %s7548_s13  ;;  %v393_v37 = vld [vmem:[%s324_s8] sm:$0xff]  ;;  %v7755_v39 = vsub.f32 %v332_v11, %v436_v24  ;;  %v7757_v40 = vsub.f32 %v335_v15, %v440_v25  ;;  %v7759_v41 = vpack.c.bf16 %v442_v27, %v438_v26  ;;  %v344_v53 = vld [vmem:[%s9635_s4 + $0x98] sm:$0xff]  ;;  %vm7552_vm0 = vmmov 0   ;;  %s312_s8 = scalar_lea.vmem %s9631_s0, %s7708_s20  ;;  %s7554_s21 = smov 8  }
  0x1d   : > { %9772 = vst [vmem:[#allocation11_spill] sm:$0xff] %v7753_v38  ;;  %v392_v44 = vld [vmem:[%s320_s16] sm:$0xff]  ;;  %403 = vrot.lane.b32.xlu1 %v393_v37, %s7549_s23  ;;  %6613 = vmatpush3.bf16.msra.mxu1 %v7740_v31  ;;  %v7769_v45 = vsub.f32 %v331_v16, %v438_v26  ;;  %v7771_v46 = vsub.f32 %v334_v17, %v442_v27  ;;  %v1293_v47 = vand.u32 4294901760, %v336_v23  ;;  %v444_v49 = vand.u32 4294901760, %v338_v28  ;;  %v347_v58 = vld [vmem:[%s9635_s4 + $0xb0] sm:$0xff]  ;;  %v346_v60 = vld [vmem:[%s9635_s4 + $0xa8] sm:$0xff] }
  0x1e   : > { %9773 = vst [vmem:[#allocation12_spill] sm:$0xff] %v7759_v41  ;;  %v7773_v48 = vsub.f32 %v333_v22, %v1290_v34  ;;  %6424 = vmatprep.subr.bf16.mxu0 %v7753_v38  ;;  %6614 = vmatprep.subr.bf16.mxu1 %v9644_v5  ;;  %v448_v50 = vand.u32 4294901760, %v341_v29  ;;  %v446_v51 = vand.u32 4294901760, %v337_v35  ;;  %v450_v52 = vand.u32 4294901760, %v340_v36  ;;  %v343_v59 = vld [vmem:[%s9635_s4 + $0x90] sm:$0xff]  ;;  %v345_v2 = vld [vmem:[%s9635_s4 + $0xa0] sm:$0xff] }
  0x1f   : > { %6426 = vmatpush1.bf16.msra.mxu0 %v7759_v41  ;;  %v7781_v54 = vpack.c.bf16 %v1293_v47, %v1290_v34  ;;  %v7783_v55 = vsub.f32 %v336_v23, %v1293_v47  ;;  %v1296_v56 = vand.u32 4294901760, %v339_v42  ;;  %v1299_v57 = vand.u32 4294901760, %v342_v43  ;;  %v348_v3 = vld [vmem:[%s9635_s4 + $0xb8] sm:$0xff]  ;;  %v350_v6 = vld [vmem:[%s9635_s4 + $0xc8] sm:$0xff]  ;;  %v353_v20 = vld [vmem:[%s9635_s4 + $0xe0] sm:$0xff]  ;;  %s7555_s14 = smov 12  }
  0x20   : > { %399 = vrot.lane.b32.xlu0 %v392_v44, %s7550_s18  ;;  %v7795_v61 = vpack.c.bf16 %v448_v50, %v444_v49  ;;  %v7797_v62 = vsub.f32 %v338_v28, %v444_v49  ;;  %v7799_v63 = vsub.f32 %v341_v29, %v448_v50  ;;  %v7801_v0 = vpack.c.bf16 %v450_v52, %v446_v51  ;;  %v349_v25 = vld [vmem:[%s9635_s4 + $0xc0] sm:$0xff]  ;;  %v352_v26 = vld [vmem:[%s9635_s4 + $0xd8] sm:$0xff]  ;;  %v351_v34 = vld [vmem:[%s9635_s4 + $0xd0] sm:$0xff]  ;;  %s7556_s15 = smov 120   ;;  %s7557_s17 = smov 124  }
  0x21   : > { %9774 = vst [vmem:[#allocation13_spill] sm:$0xff] %v7781_v54  ;;  %6616 = vmatpush3.bf16.msra.mxu1 %v7781_v54  ;;  %v7813_v7 = vsub.f32 %v337_v35, %v446_v51  ;;  %v7815_v8 = vsub.f32 %v340_v36, %v450_v52  ;;  %v7817_v9 = vpack.c.bf16 %v1299_v57, %v1296_v56  ;;  %v452_v15 = vand.u32 4294901760, %v344_v53  ;;  %v354_v35 = vld [vmem:[%s9635_s4 + $0xe8] sm:$0xff]  ;;  %v356_v36 = vld [vmem:[%s9635_s4 + $0xf8] sm:$0xff]  ;;  %v359_v47 = vld [vmem:[%s9635_s4 + $0x110] sm:$0xff]  ;;  %s7558_s19 = smov 116  }
  0x22   : > { %9775 = vst [vmem:[#allocation14_spill] sm:$0xff] %v7795_v61  ;;  %9776 = vst [vmem:[#allocation15_spill] sm:$0xff] %v7799_v63  ;;  %v7819_v10 = vsub.f32 %v339_v42, %v1296_v56  ;;  %6428 = vmatprep.subr.bf16.mxu0 %v7795_v61  ;;  %6617 = vmatprep.subr.bf16.mxu1 %v9644_v5  ;;  %v7823_v11 = vsub.f32 %v342_v43, %v1299_v57  ;;  %v456_v16 = vand.u32 4294901760, %v347_v58  ;;  %vm406_vm1 = vcmask 261120   ;;  %s306_s29 = sand.u32 1, %s7537_s25  }
  0x23   : > { %9777 = vst [vmem:[#allocation16_spill] sm:$0xff] %v7801_v0  ;;  %9778 = vst [vmem:[#allocation17_spill] sm:$0xff] %v7817_v9  ;;  %v454_v17 = vand.u32 4294901760, %v343_v59  ;;  %6430 = vmatpush1.bf16.msra.mxu0 %v7801_v0  ;;  %v458_v21 = vand.u32 4294901760, %v346_v60  ;;  %v1302_v22 = vand.u32 4294901760, %v345_v2  ;;  %v1305_v23 = vand.u32 4294901760, %v348_v3 }
  0x24   : > { %v460_v24 = vand.u32 4294901760, %v350_v6  ;;  %v7835_v27 = vpack.c.bf16 %v456_v16, %v452_v15  ;;  %v7837_v28 = vsub.f32 %v344_v53, %v452_v15  ;;  %v7839_v29 = vsub.f32 %v347_v58, %v456_v16  ;;  %v357_v16 = vld [vmem:[%s9635_s4 + $0x100] sm:$0xff] }
  0x25   : > { %v7841_v30 = vsub.f32 %v343_v59, %v454_v17  ;;  %6619 = vmatpush3.bf16.msra.mxu1 %v7817_v9  ;;  %v7853_v37 = vpack.c.bf16 %v458_v21, %v454_v17  ;;  %v7855_v42 = vsub.f32 %v346_v60, %v458_v21  ;;  %v7857_v43 = vpack.c.bf16 %v1305_v23, %v1302_v22 }
  0x26   : > { %9779 = vst [vmem:[#allocation18_spill] sm:$0xff] %v7835_v27  ;;  %v7859_v44 = vsub.f32 %v345_v2, %v1302_v22  ;;  %6432 = vmatprep.subr.bf16.mxu0 %v7835_v27  ;;  %6620 = vmatprep.subr.bf16.mxu1 %v9644_v5  ;;  %v7866_v49 = vsub.f32 %v348_v3, %v1305_v23  ;;  %v464_v50 = vand.u32 4294901760, %v353_v20  ;;  %v462_v52 = vand.u32 4294901760, %v349_v25  ;;  %v355_v3 = vld [vmem:[%s9635_s4 + $0xf0] sm:$0xff]  ;;  %v360_v23 = vld [vmem:[%s9635_s4 + $0x118] sm:$0xff] }
  0x27   : > { %9780 = vst [vmem:[#allocation19_spill] sm:$0xff] %v7853_v37  ;;  %9781 = vst [vmem:[#allocation20_spill] sm:$0xff] %v7857_v43  ;;  %v7868_v51 = vsub.f32 %v350_v6, %v460_v24  ;;  %6434 = vmatpush1.bf16.msra.mxu0 %v7853_v37  ;;  %v466_v53 = vand.u32 4294901760, %v352_v26  ;;  %v1308_v56 = vand.u32 4294901760, %v351_v34  ;;  %v1311_v57 = vand.u32 4294901760, %v354_v35  ;;  %v358_v6 = vld [vmem:[%s9635_s4 + $0x108] sm:$0xff] }
  0x28   : > { %v468_v58 = vand.u32 4294901760, %v356_v36  ;;  %v7871_v59 = vpack.c.bf16 %v464_v50, %v460_v24  ;;  %v7873_v60 = vsub.f32 %v353_v20, %v464_v50  ;;  %v7875_v2 = vsub.f32 %v349_v25, %v462_v52  ;;  %v362_v24 = vld [vmem:[%s9635_s4 + $0x128] sm:$0xff]  ;;  %v365_v25 = vld [vmem:[%s9635_s4 + $0x140] sm:$0xff]  ;;  %v368_v37 = vld [vmem:[%s9635_s4 + $0x158] sm:$0xff] }
  0x29   : > { %v472_v15 = vand.u32 4294901760, %v359_v47  ;;  %6622 = vmatpush3.bf16.msra.mxu1 %v7857_v43  ;;  %v7887_v17 = vpack.c.bf16 %v466_v53, %v462_v52  ;;  %v7889_v20 = vsub.f32 %v352_v26, %v466_v53  ;;  %v7891_v21 = vpack.c.bf16 %v1311_v57, %v1308_v56  ;;  %v361_v43 = vld [vmem:[%s9635_s4 + $0x120] sm:$0xff]  ;;  %v371_v27 = vld [vmem:[%s9635_s4 + $0x170] sm:$0xff] }
  0x2a   : > { %9782 = vst [vmem:[#allocation21_spill] sm:$0xff] %v7871_v59  ;;  %v7893_v22 = vsub.f32 %v351_v34, %v1308_v56  ;;  %6436 = vmatprep.subr.bf16.mxu0 %v7871_v59  ;;  %6623 = vmatprep.subr.bf16.mxu1 %v9644_v5  ;;  %v7906_v26 = vsub.f32 %v354_v35, %v1311_v57  ;;  %v470_v53 = vand.u32 4294901760, %v355_v3  ;;  %v474_v56 = vand.u32 4294901760, %v358_v6  ;;  %v366_v5 = vld [vmem:[%s9635_s4 + $0x148] sm:$0xff] }
  0x2b   : > { %9783 = vst [vmem:[#allocation22_spill] sm:$0xff] %v7887_v17  ;;  %9784 = vst [vmem:[#allocation23_spill] sm:$0xff] %v7891_v21  ;;  %v7908_v34 = vpack.c.bf16 %v472_v15, %v468_v58  ;;  %v7910_v50 = vsub.f32 %v356_v36, %v468_v58  ;;  %6438 = vmatpush1.bf16.msra.mxu0 %v7887_v17  ;;  %v7913_v52 = vsub.f32 %v359_v47, %v472_v15  ;;  %v364_v47 = vld [vmem:[%s9635_s4 + $0x138] sm:$0xff]  ;;  %v363_v15 = vld [vmem:[%s9635_s4 + $0x130] sm:$0xff]  ;;  %v9792_v9 = vmov 0.0|0.0  }
  0x2c   : > { %v1314_v4 = vand.u32 4294901760, %v357_v16  ;;  %v9788_v59 = vand.u32 4294901760, %v7671_v1  ;;  %v1317_v36 = vand.u32 4294901760, %v360_v23  ;;  %v476_v57 = vand.u32 4294901760, %v362_v24 }
  0x2d   : > { %9785 = vst [vmem:[#allocation24_spill] sm:$0xff] %v7908_v34  ;;  %9786 = vst [vmem:[#allocation25_spill] sm:$0xff] %v7910_v50  ;;  %6440 = vmatprep.subr.bf16.mxu0 %v7908_v34  ;;  %v480_v58 = vand.u32 4294901760, %v365_v25  ;;  %6625 = vmatpush3.bf16.msra.mxu1 %v7891_v21  ;;  %v7938_v34 = vsub.f32 %v358_v6, %v474_v56  ;;  %v367_v21 = vld [vmem:[%s9635_s4 + $0x150] sm:$0xff]  ;;  %v478_v0 = vand.u32 4294901760, %v361_v43  ;;  %v482_v61 = vand.u32 4294901760, %v364_v47 }
  0x2e   : > { %9787 = vst [vmem:[#allocation26_spill] sm:$0xff] %v7913_v52  ;;  %v7921_v35 = vsub.f32 %v7671_v1, %v9788_v59  ;;  %v7934_v1 = vpack.c.bf16 %v474_v56, %v470_v53  ;;  %v7936_v59 = vsub.f32 %v355_v3, %v470_v53  ;;  %v7940_v17 = vsub.f32 %v357_v16, %v1314_v4 }
  0x2f   : > { %9791 = vst [vmem:[#allocation29_spill] sm:$0xff] %v7938_v34  ;;  %6626 = vmatprep.subr.bf16.mxu1 %v9792_v9  ;;  %v7952_v3 = vpack.c.bf16 %v1317_v36, %v1314_v4  ;;  %v7954_v6 = vsub.f32 %v360_v23, %v1317_v36  ;;  %v7956_v16 = vpack.c.bf16 %v480_v58, %v476_v57  ;;  %v1320_v54 = vand.u32 4294901760, %v363_v15  ;;  %v370_v4 = vld [vmem:[%s9635_s4 + $0x168] sm:$0xff] }
  0x30   : > { %9789 = vst [vmem:[#allocation27_spill] sm:$0xff] %v7934_v1  ;;  %9790 = vst [vmem:[#allocation28_spill] sm:$0xff] %v7936_v59  ;;  %v7958_v53 = vsub.f32 %v362_v24, %v476_v57  ;;  %6442 = vmatpush1.bf16.msra.mxu0 %v7934_v1  ;;  %v7961_v56 = vsub.f32 %v365_v25, %v480_v58  ;;  %v1323_v41 = vand.u32 4294901760, %v366_v5  ;;  %v484_v38 = vand.u32 4294901760, %v368_v37  ;;  %v369_v24 = vld [vmem:[%s9635_s4 + $0x160] sm:$0xff] }
  0x31   : > { %9793 = vst [vmem:[#allocation30_spill] sm:$0xff] %v7952_v3  ;;  %9794 = vst [vmem:[#allocation31_spill] sm:$0xff] %v7956_v16  ;;  %6444 = vmatprep.subr.bf16.mxu0 %v7956_v16  ;;  %v488_v31 = vand.u32 4294901760, %v371_v27  ;;  %v486_v23 = vand.u32 4294901760, %v367_v21  ;;  %6628 = vmatpush3.bf16.msra.mxu1 %v7952_v3  ;;  %v7971_v25 = vpack.c.bf16 %v482_v61, %v478_v0  ;;  %v372_v16 = vld [vmem:[%s9635_s4 + $0x178] sm:$0xff]  ;;  %vm408_vm2 = vcmask 523264  }
  0x32   : > { %v7973_v36 = vsub.f32 %v361_v43, %v478_v0  ;;  %v7975_v57 = vsub.f32 %v364_v47, %v482_v61  ;;  %v7977_v58 = vsub.f32 %v363_v15, %v1320_v54  ;;  %6629 = vmatprep.subr.bf16.mxu1 %v9792_v9  ;;  %v7983_v1 = vpack.c.bf16 %v1323_v41, %v1320_v54 }
  0x33   : > { %9795 = vst [vmem:[#allocation32_spill] sm:$0xff] %v7971_v25  ;;  %v7985_v18 = vsub.f32 %v366_v5, %v1323_v41  ;;  %v7987_v12 = vpack.c.bf16 %v488_v31, %v484_v38  ;;  %v7989_v3 = vsub.f32 %v368_v37, %v484_v38  ;;  %v7992_v61 = vsub.f32 %v371_v27, %v488_v31 }
  0x34   : > { %9796 = vst [vmem:[#allocation33_spill] sm:$0xff] %v7983_v1  ;;  %6446 = vmatpush1.bf16.msra.mxu0 %v7971_v25  ;;  %v490_v0 = vand.u32 4294901760, %v370_v4  ;;  %v7994_v43 = vsub.f32 %v367_v21, %v486_v23  ;;  %v1326_v47 = vand.u32 4294901760, %v369_v24  ;;  %v1329_v15 = vand.u32 4294901760, %v372_v16 }
  0x35   : > { %9797 = vst [vmem:[#allocation34_spill] sm:$0xff] %v7987_v12  ;;  %6448 = vmatprep.subr.bf16.mxu0 %v7987_v12  ;;  %v9680_v54 = vand.u32 4294901760, %v7695_v13  ;;  %6631 = vmatpush3.bf16.msra.mxu1 %v7983_v1  ;;  %v9683_v31 = vmov 0.0   ;;  %vm410_vm3 = vcmask 785408   ;;  %vm4526_vm4 = vcmask 31744  }
  0x36   : > { %9798 = vst [vmem:[#allocation35_spill] sm:$0xff] %v7994_v43  ;;  %v8000_v41 = vpack.c.bf16 %v490_v0, %v486_v23  ;;  %v8002_v38 = vsub.f32 %v370_v4, %v490_v0  ;;  %v8004_v37 = vsub.f32 %v369_v24, %v1326_v47  ;;  %524 = vmatprep.mubr.f32.mxu0 %v9683_v31  ;;  %v9803_v23 = vand.u32 4294901760, %v7921_v35 }
  0x37   : > { %6632 = vmatprep.subr.bf16.mxu1 %v9792_v9  ;;  %v8008_v27 = vpack.c.bf16 %v1329_v15, %v1326_v47  ;;  %v8010_v21 = vsub.f32 %v372_v16, %v1329_v15  ;;  %v539_v5 = vsub.f32 %v7695_v13, %v9680_v54  ;;  %5401 = vmatprep.mubr.msk.f32.mxu1 %vm7552_vm0, %v9683_v31  ;;  %v9689_v24 = vand.u32 4294901760, %v7697_v14 }
  0x38   : > { %9799 = vst [vmem:[#allocation36_spill] sm:$0xff] %v8000_v41  ;;  %9800 = vst [vmem:[#allocation37_spill] sm:$0xff] %v8002_v38  ;;  %v551_v4 = vsub.f32 %v7921_v35, %v9803_v23  ;;  %6450 = vmatpush1.bf16.msra.mxu0 %v8000_v41  ;;  %v9692_v0 = vand.u32 4294901760, %v7712_v19  ;;  %v9697_v16 = vand.u32 4294901760, %v7742_v32  ;;  %v9805_v23 = vand.u32 4294901760, %v7755_v39 }
  0x39   : > { %9801 = vst [vmem:[#allocation38_spill] sm:$0xff] %v8008_v27  ;;  %9802 = vst [vmem:[#allocation39_spill] sm:$0xff] %v8010_v21  ;;  %v540_v15 = vand.u32 4294901760, %v539_v5  ;;  %6634 = vmatpush3.bf16.msra.mxu1 %v8008_v27  ;;  %v545_v31 = vsub.f32 %v7697_v14, %v9689_v24  ;;  %v9804_v5 = vand.u32 4294901760, %v7744_v33  ;;  %v9806_v24 = vand.u32 4294901760, %v7757_v40 }
  0x3a   : > { %v552_v54 = vand.u32 4294901760, %v551_v4  ;;  %v557_v41 = vsub.f32 %v7712_v19, %v9692_v0  ;;  %v1378_v47 = vsub.f32 %v7742_v32, %v9697_v16  ;;  %6635 = vmatprep.subr.bf16.mxu1 %v9792_v9  ;;  %v563_v27 = vsub.f32 %v7755_v39, %v9805_v23 }
  0x3b   : > { %v1385_v4 = vsub.f32 %v7744_v33, %v9804_v5  ;;  %v575_v1 = vsub.f32 %v7757_v40, %v9806_v24  ;;  %v9706_v0 = vand.u32 4294901760, %v7769_v45  ;;  %v546_v25 = vand.u32 4294901760, %v545_v31 }
  0x3c   : > { %v6451_v12 = vpack.c.bf16 %v552_v54, %v540_v15  ;;  %v558_v19 = vand.u32 4294901760, %v557_v41  ;;  %v1379_v16 = vand.u32 4294901760, %v1378_v47  ;;  %v564_v14 = vand.u32 4294901760, %v563_v27 }
  0x3d   : > { %v1386_v32 = vand.u32 4294901760, %v1385_v4  ;;  %v576_v5 = vand.u32 4294901760, %v575_v1  ;;  %v569_v54 = vsub.f32 %v7769_v45, %v9706_v0  ;;  %v9703_v15 = vand.u32 4294901760, %v7771_v46 }
  0x3e   : > { %6452 = vmatprep.subr.bf16.mxu0 %v6451_v12  ;;  %v8052_v23 = vpack.c.bf16 %v558_v19, %v546_v25  ;;  %v9704_v24 = vand.u32 4294901760, %v7773_v48  ;;  %v9705_v31 = vand.u32 4294901760, %v7783_v55  ;;  %v9707_v1 = vand.u32 4294901760, %v7797_v62 }
  0x3f   : > { %v8054_v9 = vpack.c.bf16 %v1386_v32, %v1379_v16  ;;  %v8058_v41 = vpack.c.bf16 %v576_v5, %v564_v14  ;;  %v570_v47 = vand.u32 4294901760, %v569_v54  ;;  %v581_v12 = vsub.f32 %v7771_v46, %v9703_v15 }
  0x40   : > { %9807 = vst [vmem:[#allocation40_spill] sm:$0xff] %v8052_v23  ;;  %v1392_v19 = vsub.f32 %v7773_v48, %v9704_v24  ;;  %v1399_v32 = vsub.f32 %v7783_v55, %v9705_v31  ;;  %v9708_v25 = vand.u32 4294901760, %v7799_v63  ;;  %v9716_v14 = vand.u32 4294901760, %v7813_v7 }
  0x41   : > { %9808 = vst [vmem:[#allocation41_spill] sm:$0xff] %v8054_v9  ;;  %9809 = vst [vmem:[#allocation42_spill] sm:$0xff] %v8058_v41  ;;  %v582_v27 = vand.u32 4294901760, %v581_v12  ;;  %v587_v16 = vsub.f32 %v7797_v62, %v9707_v1  ;;  %v9711_v4 = vand.u32 4294901760, %v7815_v8  ;;  %v9712_v5 = vand.u32 4294901760, %v7819_v10 }
  0x42   : > { %v1393_v54 = vand.u32 4294901760, %v1392_v19  ;;  %v1400_v15 = vand.u32 4294901760, %v1399_v32  ;;  %v599_v24 = vsub.f32 %v7799_v63, %v9708_v25  ;;  %v593_v31 = vsub.f32 %v7813_v7, %v9716_v14 }
  0x43   : > { %v8083_v0 = vpack.c.bf16 %v582_v27, %v570_v47  ;;  %v588_v12 = vand.u32 4294901760, %v587_v16  ;;  %v605_v1 = vsub.f32 %v7815_v8, %v9711_v4  ;;  %v1406_v19 = vsub.f32 %v7819_v10, %v9712_v5 }
  0x44   : > { %v8091_v32 = vpack.c.bf16 %v1400_v15, %v1393_v54  ;;  %v600_v41 = vand.u32 4294901760, %v599_v24  ;;  %v594_v9 = vand.u32 4294901760, %v593_v31  ;;  %v9713_v25 = vand.u32 4294901760, %v7823_v11 }
  0x45   : > { %9810 = vst [vmem:[#allocation43_spill] sm:$0xff] %v8083_v0  ;;  %v606_v23 = vand.u32 4294901760, %v605_v1  ;;  %v1407_v63 = vand.u32 4294901760, %v1406_v19  ;;  %v9714_v47 = vand.u32 4294901760, %v7837_v28  ;;  %v9715_v27 = vand.u32 4294901760, %v7839_v29  ;;  %v9827_v0 = vld [vmem:[#allocation8_spill] sm:$0xff] }
  0x46   : > { %9811 = vst [vmem:[#allocation44_spill] sm:$0xff] %v8091_v32  ;;  %v8096_v16 = vpack.c.bf16 %v600_v41, %v588_v12  ;;  %v1413_v4 = vsub.f32 %v7823_v11, %v9713_v25  ;;  %v9717_v5 = vand.u32 4294901760, %v7841_v30  ;;  %v9718_v15 = vand.u32 4294901760, %v7855_v42 }
  0x47   : > { %v8103_v24 = vpack.c.bf16 %v606_v23, %v594_v9  ;;  %v611_v31 = vsub.f32 %v7837_v28, %v9714_v47  ;;  %v623_v1 = vsub.f32 %v7839_v29, %v9715_v27  ;;  %v9719_v41 = vand.u32 4294901760, %v7859_v44 }
  0x48   : > { %9812 = vst [vmem:[#allocation45_spill] sm:$0xff] %v8096_v16  ;;  %v1414_v54 = vand.u32 4294901760, %v1413_v4  ;;  %v617_v12 = vsub.f32 %v7841_v30, %v9717_v5  ;;  %v629_v9 = vsub.f32 %v7855_v42, %v9718_v15  ;;  %v9722_v23 = vand.u32 4294901760, %v7866_v49 }
  0x49   : > { %9813 = vst [vmem:[#allocation46_spill] sm:$0xff] %v8103_v24  ;;  %v612_v19 = vand.u32 4294901760, %v611_v31  ;;  %v624_v25 = vand.u32 4294901760, %v623_v1  ;;  %v1420_v47 = vsub.f32 %v7859_v44, %v9719_v41  ;;  %v9721_v27 = vand.u32 4294901760, %v7868_v51 }
  0x4a   : > { %v8123_v14 = vpack.c.bf16 %v1414_v54, %v1407_v63  ;;  %v618_v4 = vand.u32 4294901760, %v617_v12  ;;  %v630_v24 = vand.u32 4294901760, %v629_v9  ;;  %v1427_v5 = vsub.f32 %v7866_v49, %v9722_v23 }
  0x4b   : > { %v8128_v16 = vpack.c.bf16 %v624_v25, %v612_v19  ;;  %v1421_v15 = vand.u32 4294901760, %v1420_v47  ;;  %v635_v31 = vsub.f32 %v7868_v51, %v9721_v27  ;;  %v9720_v1 = vand.u32 4294901760, %v7873_v60 }
  0x4c   : > { %9814 = vst [vmem:[#allocation47_spill] sm:$0xff] %v8123_v14  ;;  %v8134_v41 = vpack.c.bf16 %v630_v24, %v618_v4  ;;  %v1428_v32 = vand.u32 4294901760, %v1427_v5  ;;  %v9723_v63 = vand.u32 4294901760, %v7875_v2  ;;  %v9724_v54 = vand.u32 4294901760, %v7889_v20 }
  0x4d   : > { %9815 = vst [vmem:[#allocation48_spill] sm:$0xff] %v8128_v16  ;;  %v636_v12 = vand.u32 4294901760, %v635_v31  ;;  %v647_v25 = vsub.f32 %v7873_v60, %v9720_v1  ;;  %v9725_v47 = vand.u32 4294901760, %v7893_v22  ;;  %v9726_v9 = vand.u32 4294901760, %v7906_v26 }
  0x4e   : > { %9816 = vst [vmem:[#allocation49_spill] sm:$0xff] %v8134_v41  ;;  %v8143_v19 = vpack.c.bf16 %v1428_v32, %v1421_v15  ;;  %v641_v24 = vsub.f32 %v7875_v2, %v9723_v63  ;;  %v653_v5 = vsub.f32 %v7889_v20, %v9724_v54  ;;  %v9727_v4 = vand.u32 4294901760, %v7910_v50 }
  0x4f   : > { %v648_v31 = vand.u32 4294901760, %v647_v25  ;;  %v1434_v1 = vsub.f32 %v7893_v22, %v9725_v47  ;;  %v1441_v32 = vsub.f32 %v7906_v26, %v9726_v9  ;;  %v9728_v15 = vand.u32 4294901760, %v7913_v52 }
  0x50   : > { %9817 = vst [vmem:[#allocation50_spill] sm:$0xff] %v8143_v19  ;;  %v642_v27 = vand.u32 4294901760, %v641_v24  ;;  %v654_v23 = vand.u32 4294901760, %v653_v5  ;;  %v659_v63 = vsub.f32 %v7910_v50, %v9727_v4  ;;  %v9730_v54 = vand.u32 4294901760, %v7936_v59 }
  0x51   : > { %v8163_v19 = vpack.c.bf16 %v648_v31, %v636_v12  ;;  %v1435_v25 = vand.u32 4294901760, %v1434_v1  ;;  %v1442_v41 = vand.u32 4294901760, %v1441_v32  ;;  %v671_v47 = vsub.f32 %v7913_v52, %v9728_v15 }
  0x52   : > { %v8168_v16 = vpack.c.bf16 %v654_v23, %v642_v27  ;;  %v660_v9 = vand.u32 4294901760, %v659_v63  ;;  %v665_v24 = vsub.f32 %v7936_v59, %v9730_v54  ;;  %v9729_v5 = vand.u32 4294901760, %v7938_v34 }
  0x53   : > { %9818 = vst [vmem:[#allocation51_spill] sm:$0xff] %v8163_v19  ;;  %v8174_v4 = vpack.c.bf16 %v1442_v41, %v1435_v25  ;;  %v672_v14 = vand.u32 4294901760, %v671_v47  ;;  %v9731_v12 = vand.u32 4294901760, %v7940_v17  ;;  %v9732_v1 = vand.u32 4294901760, %v7954_v6 }
  0x54   : > { %9819 = vst [vmem:[#allocation52_spill] sm:$0xff] %v8168_v16  ;;  %v666_v31 = vand.u32 4294901760, %v665_v24  ;;  %v677_v27 = vsub.f32 %v7938_v34, %v9729_v5  ;;  %v9733_v23 = vand.u32 4294901760, %v7958_v53  ;;  %v9734_v63 = vand.u32 4294901760, %v7961_v56 }
  0x55   : > { %9820 = vst [vmem:[#allocation53_spill] sm:$0xff] %v8174_v4  ;;  %v8183_v32 = vpack.c.bf16 %v672_v14, %v660_v9  ;;  %v1448_v41 = vsub.f32 %v7940_v17, %v9731_v12  ;;  %v1455_v47 = vsub.f32 %v7954_v6, %v9732_v1  ;;  %v9735_v25 = vand.u32 4294901760, %v7973_v36 }
  0x56   : > { %v678_v24 = vand.u32 4294901760, %v677_v27  ;;  %v683_v15 = vsub.f32 %v7958_v53, %v9733_v23  ;;  %v695_v14 = vsub.f32 %v7961_v56, %v9734_v63  ;;  %v9738_v9 = vand.u32 4294901760, %v7975_v57 }
  0x57   : > { %9821 = vst [vmem:[#allocation54_spill] sm:$0xff] %v8183_v32  ;;  %v1449_v5 = vand.u32 4294901760, %v1448_v41  ;;  %v1456_v54 = vand.u32 4294901760, %v1455_v47  ;;  %v689_v12 = vsub.f32 %v7973_v36, %v9735_v25  ;;  %v9737_v1 = vand.u32 4294901760, %v7977_v58 }
  0x58   : > { %v8203_v32 = vpack.c.bf16 %v678_v24, %v666_v31  ;;  %v684_v27 = vand.u32 4294901760, %v683_v15  ;;  %v696_v4 = vand.u32 4294901760, %v695_v14  ;;  %v701_v23 = vsub.f32 %v7975_v57, %v9738_v9 }
  0x59   : > { %v8208_v16 = vpack.c.bf16 %v1456_v54, %v1449_v5  ;;  %v690_v63 = vand.u32 4294901760, %v689_v12  ;;  %v1462_v41 = vsub.f32 %v7977_v58, %v9737_v1  ;;  %v9736_v47 = vand.u32 4294901760, %v7985_v18 }
  0x5a   : > { %9822 = vst [vmem:[#allocation55_spill] sm:$0xff] %v8203_v32  ;;  %v8214_v25 = vpack.c.bf16 %v696_v4, %v684_v27  ;;  %v702_v19 = vand.u32 4294901760, %v701_v23  ;;  %v9739_v31 = vand.u32 4294901760, %v7989_v3  ;;  %v9740_v15 = vand.u32 4294901760, %v7992_v61  ;;  %v9826_v32 = vld [vmem:[#allocation6_spill] sm:$0xff] }
  0x5b   : > { %9823 = vst [vmem:[#allocation56_spill] sm:$0xff] %v8208_v16  ;;  %v1463_v24 = vand.u32 4294901760, %v1462_v41  ;;  %v1469_v54 = vsub.f32 %v7985_v18, %v9736_v47  ;;  %v9741_v5 = vand.u32 4294901760, %v7994_v43  ;;  %v9742_v12 = vand.u32 4294901760, %v8002_v38 }
  0x5c   : > { %9824 = vst [vmem:[#allocation57_spill] sm:$0xff] %v8214_v25  ;;  %v8223_v14 = vpack.c.bf16 %v702_v19, %v690_v63  ;;  %v707_v4 = vsub.f32 %v7989_v3, %v9739_v31  ;;  %v719_v23 = vsub.f32 %v7992_v61, %v9740_v15  ;;  %v9747_v27 = vand.u32 4294901760, %v8004_v37 }
  0x5d   : > { %v1470_v41 = vand.u32 4294901760, %v1469_v54  ;;  %v713_v47 = vsub.f32 %v7994_v43, %v9741_v5  ;;  %v725_v19 = vsub.f32 %v8002_v38, %v9742_v12  ;;  %v1482_v63 = vand.u32 4294901760, %v8010_v21 }
  0x5e   : > { %9825 = vst [vmem:[#allocation58_spill] sm:$0xff] %v8223_v14  ;;  %v708_v1 = vand.u32 4294901760, %v707_v4  ;;  %v720_v9 = vand.u32 4294901760, %v719_v23  ;;  %v1476_v31 = vsub.f32 %v8004_v37, %v9747_v27  ;;  %v9828_v23 = vld [vmem:[#allocation10_spill] sm:$0xff]  ;;  %v9838_v4 = vand.u32 4294901760, %v7936_v59 }
  0x5f   : > { %v8244_v54 = vpack.c.bf16 %v1470_v41, %v1463_v24  ;;  %v714_v14 = vand.u32 4294901760, %v713_v47  ;;  %v726_v25 = vand.u32 4294901760, %v725_v19  ;;  %v1483_v5 = vsub.f32 %v8010_v21, %v1482_v63  ;;  %v390_v47 = vld [vmem:[%s312_s8] sm:$0xff] }
  0x60   : > { %v8247_v16 = vpack.c.bf16 %v720_v9, %v708_v1  ;;  %v1477_v12 = vand.u32 4294901760, %v1476_v31  ;;  %v9829_v9 = vld [vmem:[#allocation15_spill] sm:$0xff]  ;;  %v9832_v1 = vand.u32 4294901760, %v7875_v2  ;;  %v9833_v31 = vand.u32 4294901760, %v7889_v20 }
  0x61   : > { %v8253_v43 = vpack.c.bf16 %v726_v25, %v714_v14  ;;  %v1484_v27 = vand.u32 4294901760, %v1483_v5  ;;  %v9830_v25 = vld [vmem:[#allocation35_spill] sm:$0xff]  ;;  %v9835_v24 = vand.u32 4294901760, %v7893_v22  ;;  %v9839_v15 = vand.u32 4294901760, %v7938_v34 }
  0x62   : > { %v8307_v19 = vpack.c.bf16 %v9833_v31, %v9832_v1  ;;  %v9841_v50 = vand.u32 4294901760, %v7954_v6  ;;  %v9842_v52 = vand.u32 4294901760, %v7958_v53  ;;  %v9843_v59 = vand.u32 4294901760, %v7961_v56 }
  0x63   : > { %v8267_v14 = vpack.c.bf16 %v1484_v27, %v1477_v12  ;;  %v9831_v27 = vmov %v8002_v38  ;;  %v9836_v12 = vand.u32 4294901760, %v7906_v26  ;;  %v8319_v21 = vpack.c.bf16 %v9839_v15, %v9838_v4 }
  0x64   : > { %9834 = vst [vmem:[#allocation6_spill] sm:$0xff] %v8307_v19  ;;  %v9840_v19 = vand.u32 4294901760, %v7940_v17  ;;  %v8334_v34 = vpack.c.bf16 %v9843_v59, %v9842_v52  ;;  %v9845_v4 = vand.u32 4294901760, %v7973_v36  ;;  %v9851_v52 = vand.u32 4294901760, %v7989_v3 }
  0x65   : > { %v8313_v38 = vpack.c.bf16 %v9836_v12, %v9835_v24  ;;  %v9852_v59 = vand.u32 4294901760, %v7992_v61  ;;  %vm4528_vm5 = vcmask 64512   ;;  %vm4530_vm6 = vcmask 97280  }
  0x66   : > { %v8326_v24 = vpack.c.bf16 %v9841_v50, %v9840_v19  ;;  %9844 = vst [vmem:[#allocation10_spill] sm:$0xff] %v8334_v34  ;;  %v9848_v50 = vand.u32 4294901760, %v7977_v58  ;;  %v9849_v19 = vand.u32 4294901760, %v7985_v18  ;;  %v9861_v34 = vmov 0.0|0.0  }
  0x67   : > { %9837 = vst [vmem:[#allocation8_spill] sm:$0xff] %v8313_v38 }
  0x8e   : > { %v396_v41 = vpop.permute.xlu0 %395 }
  0x8f   : > { %v404_v5 = vpop.permute.xlu1 %403  ;;  %v407_v1 = vsel %vm406_vm1, %v390_v47, %v396_v41  ;;  %v9846_v47 = vand.u32 4294901760, %v7975_v57 }
  0x91   : > { %v8342_v41 = vpack.c.bf16 %v9846_v47, %v9845_v4  ;;  %v9854_v4 = vand.u32 4294901760, %v9830_v25  ;;  %v9855_v47 = vand.u32 4294901760, %v9831_v27 }
  0x92   : > { %v400_v31 = vpop.permute.xlu0 %399 }
  0x93   : > { %v409_v12 = vsel %vm408_vm2, %v407_v1, %v400_v31  ;;  %9847 = vst [vmem:[#allocation15_spill] sm:$0xff] %v8342_v41  ;;  %v8348_v1 = vpack.c.bf16 %v9849_v19, %v9848_v50  ;;  %v8357_v31 = vpack.c.bf16 %v9852_v59, %v9851_v52  ;;  %v8366_v41 = vpack.c.bf16 %v9855_v47, %v9854_v4  ;;  %v9858_v52 = vld [vmem:[#allocation40_spill] sm:$0xff]  ;;  %v9859_v59 = vld [vmem:[#allocation41_spill] sm:$0xff] }
  0x94   : > { %v411_v38 = vsel %vm410_vm3, %v409_v12, %v404_v5  ;;  %v9856_v50 = vand.u32 4294901760, %v8004_v37  ;;  %v9862_v4 = vmov 0.0   ;;  %v9864_v47 = vld [vmem:[#allocation44_spill] sm:$0xff] }
  0x95   : > { %v8336_v15 = vand.u32 4294901760, %v411_v38  ;;  %9850 = vst [vmem:[#allocation35_spill] sm:$0xff] %v8348_v1  ;;  %9853 = vst [vmem:[#allocation37_spill] sm:$0xff] %v8357_v31  ;;  %v9860_v31 = vld [vmem:[#allocation42_spill] sm:$0xff] }
  0x96   : > { %v8370_v19 = vpack.c.bf16 %v1482_v63, %v9856_v50  ;;  %v9863_v63 = vld [vmem:[#allocation43_spill] sm:$0xff]  ;;  %v9865_v50 = vld [vmem:[#allocation45_spill] sm:$0xff] }
  0x97   : > { %v8351_v5 = vsub.f32 %v411_v38, %v8336_v15 }
  0x98   : > { %9857 = vst [vmem:[#allocation59_spill] sm:$0xff] %v8370_v19  ;;  %v9871_v19 = vld [vmem:[#allocation51_spill] sm:$0xff] }
  0x99   : > { %v8360_v12 = vand.u32 4294901760, %v8351_v5 }
  0x9b   : > { %v528_v38 = vsub.f32 %v8351_v5, %v8360_v12 }
  0x9d   : > { %v529_v1 = vand.u32 4294901760, %v528_v38  ;;  %v9867_v38 = vld [vmem:[#allocation47_spill] sm:$0xff] }
  0x9f   : > { %530 = vmatmul.mubr.f32.vlgmr.msra.gmra.mrb[0].mxu0 %v529_v1  ;;  %5402 = vmatmul.mubr.f32.vlgmr.msra.gmra.mrb[0].mxu1 %v529_v1  ;;  %v9866_v1 = vld [vmem:[#allocation46_spill] sm:$0xff] }
  0xa0   : > { %6454 = vmatpush1.bf16.msra.mxu0 %v9858_v52  ;;  %6637 = vmatpush3.bf16.msra.mxu1 %v9859_v59  ;;  %v9869_v52 = vld [vmem:[#allocation49_spill] sm:$0xff]  ;;  %v9870_v59 = vld [vmem:[#allocation50_spill] sm:$0xff] }
  0xa1   : > { %6456 = vmatprep.subr.bf16.mxu0 %v9860_v31  ;;  %6638 = vmatprep.subr.bf16.mxu1 %v9861_v34  ;;  %v9868_v31 = vld [vmem:[#allocation48_spill] sm:$0xff] }
  0xa2   : > { %760 = vmatprep.mubr.f32.mxu0 %v9862_v4  ;;  %5436 = vmatprep.mubr.msk.f32.mxu1 %vm7552_vm0, %v9862_v4 }
  0xa4   : > { %6458 = vmatpush1.bf16.msra.mxu0 %v9863_v63  ;;  %6640 = vmatpush3.bf16.msra.mxu1 %v9864_v47  ;;  %v9872_v63 = vld [vmem:[#allocation52_spill] sm:$0xff]  ;;  %v9873_v47 = vld [vmem:[#allocation53_spill] sm:$0xff] }
  0xa5   : > { %6460 = vmatprep.subr.bf16.mxu0 %v9865_v50  ;;  %6641 = vmatprep.subr.bf16.mxu1 %v9861_v34  ;;  %v9874_v50 = vld [vmem:[#allocation54_spill] sm:$0xff] }
  0xa8   : > { %6462 = vmatpush1.bf16.msra.mxu0 %v9866_v1  ;;  %6643 = vmatpush3.bf16.msra.mxu1 %v9867_v38  ;;  %v9875_v1 = vld [vmem:[#allocation55_spill] sm:$0xff]  ;;  %v9876_v38 = vld [vmem:[#allocation56_spill] sm:$0xff] }
  0xa9   : > { %6464 = vmatprep.subr.bf16.mxu0 %v9868_v31  ;;  %6644 = vmatprep.subr.bf16.mxu1 %v9861_v34  ;;  %v9877_v31 = vld [vmem:[#allocation57_spill] sm:$0xff] }
  0xac   : > { %6466 = vmatpush1.bf16.msra.mxu0 %v9869_v52  ;;  %6646 = vmatpush3.bf16.msra.mxu1 %v9870_v59  ;;  %v9878_v52 = vld [vmem:[#allocation58_spill] sm:$0xff]  ;;  %v9884_v59 = vpack.c.bf16 %v7783_v55, %v7773_v48 }
  0xad   : > { %6468 = vmatprep.subr.bf16.mxu0 %v9871_v19  ;;  %6647 = vmatprep.subr.bf16.mxu1 %v9861_v34  ;;  %v9879_v19 = vpack.c.bf16 %v7921_v35, %v7695_v13 }
  0xb0   : > { %6470 = vmatpush1.bf16.msra.mxu0 %v9872_v63  ;;  %6649 = vmatpush3.bf16.msra.mxu1 %v9873_v47  ;;  %v9885_v63 = vpack.c.bf16 %v9829_v9, %v7797_v62  ;;  %v9886_v47 = vpack.c.bf16 %v7815_v8, %v7813_v7 }
  0xb1   : > { %6472 = vmatprep.subr.bf16.mxu0 %v9874_v50  ;;  %6650 = vmatprep.subr.bf16.mxu1 %v9861_v34  ;;  %v9887_v50 = vpack.c.bf16 %v7823_v11, %v7819_v10 }
  0xb4   : > { %6474 = vmatpush1.bf16.msra.mxu0 %v9875_v1  ;;  %6652 = vmatpush3.bf16.msra.mxu1 %v9876_v38  ;;  %v9888_v1 = vpack.c.bf16 %v7839_v29, %v7837_v28  ;;  %v9889_v38 = vpack.c.bf16 %v7855_v42, %v7841_v30 }
  0xb5   : > { %6476 = vmatprep.subr.bf16.mxu0 %v9877_v31  ;;  %6653 = vmatprep.subr.bf16.mxu1 %v9861_v34  ;;  %v9890_v31 = vpack.c.bf16 %v7866_v49, %v7859_v44 }
  0xb8   : > { %6478 = vmatpush1.bf16.msra.mxu0 %v9878_v52  ;;  %6655 = vmatpush3.bf16.msra.mxu1 %v8244_v54  ;;  %v9880_v54 = vpack.c.bf16 %v9827_v0, %v9826_v32  ;;  %v9891_v52 = vpack.c.bf16 %v7873_v60, %v7868_v51 }
  0xb9   : > { %6480 = vmatprep.subr.bf16.mxu0 %v8247_v16  ;;  %6656 = vmatprep.subr.bf16.mxu1 %v9861_v34  ;;  %v9881_v16 = vpack.c.bf16 %v7744_v33, %v9828_v23 }
  0xbc   : > { %6482 = vmatpush1.bf16.msra.mxu0 %v8253_v43  ;;  %6658 = vmatpush3.bf16.msra.mxu1 %v8267_v14  ;;  %v9882_v43 = vpack.c.bf16 %v7757_v40, %v7755_v39  ;;  %v9883_v14 = vpack.c.bf16 %v7771_v46, %v7769_v45 }
  0xbd   : > { %6484 = vmatprep.subr.bf16.mxu0 %v9879_v19  ;;  %6659 = vmatprep.subr.bf16.mxu1 %v9861_v34  ;;  %v9892_v19 = vpack.c.bf16 %v7889_v20, %v7875_v2  ;;  %v9901_v2 = vpack.c.bf16 %v7961_v56, %v7958_v53  ;;  %v9902_v20 = vpack.c.bf16 %v7975_v57, %v7973_v36  ;;  %v9908_v56 = vld [vmem:[#allocation5_spill] sm:$0xff]  ;;  %v9911_v36 = vld [vmem:[#allocation11_spill] sm:$0xff]  ;;  %v9912_v57 = vld [vmem:[#allocation12_spill] sm:$0xff] }
  0xbf   : > { %762 = vmatmul.mubr.f32.vlgmr.msra.gmra.mrb[0].mxu0 %v8336_v15  ;;  %5437 = vmatmul.mubr.f32.vlgmr.msra.gmra.mrb[0].mxu1 %v8336_v15 }
  0xc0   : > { %6486 = vmatpush1.bf16.msra.mxu0 %v9880_v54  ;;  %6661 = vmatpush3.bf16.msra.mxu1 %v9881_v16  ;;  %v9893_v54 = vpack.c.bf16 %v7906_v26, %v7893_v22  ;;  %v9894_v16 = vld [vmem:[#allocation26_spill] sm:$0xff]  ;;  %v9903_v22 = vpack.c.bf16 %v7985_v18, %v7977_v58  ;;  %v9904_v26 = vpack.c.bf16 %v7992_v61, %v7989_v3  ;;  %v9909_v18 = vld [vmem:[#allocation7_spill] sm:$0xff]  ;;  %v9910_v3 = vld [vmem:[#allocation9_spill] sm:$0xff] }
  0xc1   : > { %6488 = vmatprep.subr.bf16.mxu0 %v9882_v43  ;;  %6662 = vmatprep.subr.bf16.mxu1 %v9861_v34  ;;  %v9895_v43 = vld [vmem:[#allocation25_spill] sm:$0xff]  ;;  %v9914_v61 = vld [vmem:[#allocation14_spill] sm:$0xff] }
  0xc2   : > { %896 = vmatprep.mubr.f32.mxu0 %v9862_v4  ;;  %5471 = vmatprep.mubr.msk.f32.mxu1 %vm7552_vm0, %v9862_v4  ;;  %v9913_v58 = vld [vmem:[#allocation13_spill] sm:$0xff] }
  0xc4   : > { %6490 = vmatpush1.bf16.msra.mxu0 %v9883_v14  ;;  %6664 = vmatpush3.bf16.msra.mxu1 %v9884_v59  ;;  %v9896_v14 = vpack.c.bf16 %v9894_v16, %v9895_v43  ;;  %v9897_v59 = vld [vmem:[#allocation29_spill] sm:$0xff] }
  0xc5   : > { %6492 = vmatprep.subr.bf16.mxu0 %v9885_v63  ;;  %6665 = vmatprep.subr.bf16.mxu1 %v9861_v34  ;;  %v9898_v63 = vld [vmem:[#allocation28_spill] sm:$0xff] }
  0xc8   : > { %6494 = vmatpush1.bf16.msra.mxu0 %v9886_v47  ;;  %6667 = vmatpush3.bf16.msra.mxu1 %v9887_v50  ;;  %v9899_v47 = vpack.c.bf16 %v9897_v59, %v9898_v63  ;;  %v9900_v50 = vpack.c.bf16 %v7954_v6, %v7940_v17  ;;  %v9905_v17 = vpack.c.bf16 %v9831_v27, %v9830_v25  ;;  %v9906_v6 = vld [vmem:[#allocation39_spill] sm:$0xff]  ;;  %v9916_v25 = vld [vmem:[#allocation17_spill] sm:$0xff]  ;;  %v9917_v27 = vld [vmem:[#allocation18_spill] sm:$0xff] }
  0xc9   : > { %6496 = vmatprep.subr.bf16.mxu0 %v9888_v1  ;;  %6668 = vmatprep.subr.bf16.mxu1 %v9861_v34  ;;  %v9907_v53 = vpack.c.bf16 %v9906_v6, %v8004_v37  ;;  %v9915_v37 = vld [vmem:[#allocation16_spill] sm:$0xff]  ;;  %v9926_v59 = vld [vmem:[#allocation31_spill] sm:$0xff]  ;;  %v9934_v6 = vand.u32 4294901760, %v9826_v32  ;;  %v9941_v32 = vand.u32 4294901760, %v7771_v46  ;;  %v9947_v46 = vand.u32 4294901760, %v7815_v8 }
  0xca   : > { %v9919_v1 = vld [vmem:[#allocation20_spill] sm:$0xff]  ;;  %v9953_v8 = vand.u32 4294901760, %v7855_v42  ;;  %v9959_v42 = vand.u32 4294901760, %v9894_v16  ;;  %v9965_v16 = vld [vmem:[#allocation37_spill] sm:$0xff] }
  0xcb   : > { %v9927_v63 = vld [vmem:[#allocation32_spill] sm:$0xff] }
  0xcc   : > { %6498 = vmatpush1.bf16.msra.mxu0 %v9889_v38  ;;  %6670 = vmatpush3.bf16.msra.mxu1 %v9890_v31  ;;  %v9920_v38 = vld [vmem:[#allocation21_spill] sm:$0xff]  ;;  %v9921_v31 = vld [vmem:[#allocation22_spill] sm:$0xff] }
  0xcd   : > { %6500 = vmatprep.subr.bf16.mxu0 %v9891_v52  ;;  %6671 = vmatprep.subr.bf16.mxu1 %v9861_v34  ;;  %v9922_v52 = vld [vmem:[#allocation23_spill] sm:$0xff] }
  0xd0   : > { %6502 = vmatpush1.bf16.msra.mxu0 %v9892_v19  ;;  %6673 = vmatpush3.bf16.msra.mxu1 %v9893_v54  ;;  %v9923_v19 = vld [vmem:[#allocation24_spill] sm:$0xff]  ;;  %v9924_v54 = vld [vmem:[#allocation27_spill] sm:$0xff] }
  0xd1   : > { %6504 = vmatprep.subr.bf16.mxu0 %v9896_v14  ;;  %6674 = vmatprep.subr.bf16.mxu1 %v9861_v34  ;;  %v9925_v14 = vld [vmem:[#allocation30_spill] sm:$0xff] }
  0xd4   : > { %6506 = vmatpush1.bf16.msra.mxu0 %v9899_v47  ;;  %6676 = vmatpush3.bf16.msra.mxu1 %v9900_v50  ;;  %v9928_v47 = vld [vmem:[#allocation33_spill] sm:$0xff]  ;;  %v9929_v50 = vld [vmem:[#allocation34_spill] sm:$0xff] }
  0xd5   : > { %6508 = vmatprep.subr.bf16.mxu0 %v9901_v2  ;;  %6677 = vmatprep.subr.bf16.mxu1 %v9861_v34  ;;  %v9930_v2 = vand.u32 4294901760, %v7695_v13  ;;  %v9938_v13 = vand.u32 4294901760, %v7755_v39  ;;  %v9944_v39 = vand.u32 4294901760, %v7797_v62 }
  0xd8   : > { %6510 = vmatpush1.bf16.msra.mxu0 %v9902_v20  ;;  %6679 = vmatpush3.bf16.msra.mxu1 %v9903_v22  ;;  %v9931_v20 = vand.u32 4294901760, %v7921_v35  ;;  %v9939_v35 = vand.u32 4294901760, %v7757_v40  ;;  %v9945_v40 = vand.u32 4294901760, %v9829_v9  ;;  %v9950_v9 = vand.u32 4294901760, %v7837_v28 }
  0xd9   : > { %6512 = vmatprep.subr.bf16.mxu0 %v9904_v26  ;;  %6680 = vmatprep.subr.bf16.mxu1 %v9861_v34  ;;  %v9932_v26 = vld [vmem:[#allocation36_spill] sm:$0xff]  ;;  %v9956_v28 = vand.u32 4294901760, %v7868_v51  ;;  %v9962_v51 = vld [vmem:[#allocation10_spill] sm:$0xff] }
  0xda   : > { %v6547_v22 = vpack.c.bf16 %v9931_v20, %v9930_v2  ;;  %v6551_v2 = vpack.c.bf16 %v9939_v35, %v9938_v13  ;;  %v9961_v13 = vld [vmem:[#allocation8_spill] sm:$0xff]  ;;  %v9966_v35 = vld [vmem:[#allocation59_spill] sm:$0xff] }
  0xdc   : > { %6514 = vmatpush1.bf16.msra.mxu0 %v9905_v17  ;;  %6682 = vmatpush3.bf16.msra.mxu1 %v9907_v53  ;;  %v9933_v17 = vld [vmem:[#allocation38_spill] sm:$0xff]  ;;  %v9935_v53 = vand.u32 4294901760, %v9827_v0  ;;  %v9940_v0 = vand.u32 4294901760, %v7769_v45  ;;  %v9946_v45 = vand.u32 4294901760, %v7813_v7  ;;  %v9952_v7 = vand.u32 4294901760, %v7841_v30 }
  0xdd   : > { %6516 = vmatprep.subr.bf16.mxu0 %v9908_v56  ;;  %6683 = vmatprep.subr.bf16.mxu1 %v9861_v34  ;;  %v9958_v30 = vand.u32 4294901760, %v9895_v43  ;;  %v9964_v43 = vld [vmem:[#allocation35_spill] sm:$0xff] }
  0xdf   : > { %899 = vmatmul.mubr.f32.vlgmr.msra.gmra.mrb[0].mxu0 %v8351_v5  ;;  %5472 = vmatmul.mubr.f32.vlgmr.msra.gmra.mrb[0].mxu1 %v8351_v5  ;;  %v9918_v5 = vld [vmem:[#allocation19_spill] sm:$0xff] }
  0xe0   : > { %6518 = vmatpush1.bf16.msra.mxu0 %v9909_v18  ;;  %6685 = vmatpush3.bf16.msra.mxu1 %v9910_v3 }
  0xe1   : > { %6520 = vmatprep.subr.bf16.mxu0 %v9911_v36  ;;  %6686 = vmatprep.subr.bf16.mxu1 %v9861_v34 }
  0xe2   : > { %1001 = vmatprep.mubr.f32.mxu0 %v9862_v4  ;;  %5506 = vmatprep.mubr.msk.f32.mxu1 %vm7552_vm0, %v9862_v4 }
  0xe4   : > { %6522 = vmatpush1.bf16.msra.mxu0 %v9912_v57  ;;  %6688 = vmatpush3.bf16.msra.mxu1 %v9913_v58 }
  0xe5   : > { %6524 = vmatprep.subr.bf16.mxu0 %v9914_v61  ;;  %6689 = vmatprep.subr.bf16.mxu1 %v9861_v34 }
  0xe8   : > { %6526 = vmatpush1.bf16.msra.mxu0 %v9915_v37  ;;  %6691 = vmatpush3.bf16.msra.mxu1 %v9916_v25 }
  0xe9   : > { %6528 = vmatprep.subr.bf16.mxu0 %v9917_v27  ;;  %6692 = vmatprep.subr.bf16.mxu1 %v9861_v34 }
  0xec   : > { %6530 = vmatpush1.bf16.msra.mxu0 %v9918_v5  ;;  %6694 = vmatpush3.bf16.msra.mxu1 %v9919_v1 }
  0xed   : > { %6532 = vmatprep.subr.bf16.mxu0 %v9920_v38  ;;  %6695 = vmatprep.subr.bf16.mxu1 %v9861_v34 }
  0xf0   : > { %6534 = vmatpush1.bf16.msra.mxu0 %v9921_v31  ;;  %6697 = vmatpush3.bf16.msra.mxu1 %v9922_v52 }
  0xf1   : > { %6536 = vmatprep.subr.bf16.mxu0 %v9923_v19  ;;  %6698 = vmatprep.subr.bf16.mxu1 %v9861_v34 }
  0xf4   : > { %6538 = vmatpush1.bf16.msra.mxu0 %v9924_v54  ;;  %6700 = vmatpush3.bf16.msra.mxu1 %v9925_v14 }
  0xf5   : > { %6540 = vmatprep.subr.bf16.mxu0 %v9926_v59  ;;  %6701 = vmatprep.subr.bf16.mxu1 %v9861_v34 }
  0xf8   : > { %6542 = vmatpush1.bf16.msra.mxu0 %v9927_v63  ;;  %6703 = vmatpush3.bf16.msra.mxu1 %v9928_v47  ;;  %v6549_v63 = vpack.c.bf16 %v9935_v53, %v9934_v6  ;;  %v9936_v47 = vand.u32 4294901760, %v9828_v23  ;;  %v9942_v23 = vand.u32 4294901760, %v7773_v48  ;;  %v6557_v48 = vpack.c.bf16 %v9947_v46, %v9946_v45 }
  0xf9   : > { %6544 = vmatprep.subr.bf16.mxu0 %v9929_v50  ;;  %6704 = vmatprep.subr.bf16.mxu1 %v9861_v34  ;;  %v9937_v50 = vand.u32 4294901760, %v7744_v33  ;;  %v6553_v33 = vpack.c.bf16 %v9941_v32, %v9940_v0  ;;  %v382_v0 = vld [vmem:[%s9637_s6 + $0x40] sm:$0xff]  ;;  %v383_v32 = vld [vmem:[%s9637_s6 + $0x48] sm:$0xff] }
  0xfb   : > { %v6708_v59 = vpack.c.bf16 %v9937_v50, %v9936_v47  ;;  %v9943_v47 = vand.u32 4294901760, %v7783_v55  ;;  %v9948_v55 = vand.u32 4294901760, %v7819_v10  ;;  %v9954_v10 = vand.u32 4294901760, %v7859_v44 }
  0xfc   : > { %6546 = vmatpush1.bf16.msra.mxu0 %v9932_v26  ;;  %6706 = vmatpush3.bf16.msra.mxu1 %v9933_v17  ;;  %v6567_v44 = vpack.c.bf16 %v9959_v42, %v9958_v30 }
  0xfd   : > { %6548 = vmatprep.subr.bf16.mxu0 %v6547_v22  ;;  %6707 = vmatprep.subr.bf16.mxu1 %v9861_v34  ;;  %v6711_v50 = vpack.c.bf16 %v9943_v47, %v9942_v23  ;;  %v6561_v22 = vpack.c.bf16 %v9953_v8, %v9952_v7  ;;  %v1966_v23 = vand.u32 4294901760, %v383_v32  ;;  %v388_v8 = vld [vmem:[%s9637_s6 + $0x70] sm:$0xff] }
  0xff   : > { %1005 = vmatmul.mubr.f32.vlgmr.msra.gmra.mrb[0].mxu0 %v8360_v12  ;;  %5507 = vmatmul.mubr.f32.vlgmr.msra.gmra.mrb[0].mxu1 %v8360_v12  ;;  %v6555_v12 = vpack.c.bf16 %v9945_v40, %v9944_v39  ;;  %v384_v39 = vld [vmem:[%s9637_s6 + $0x50] sm:$0xff]  ;;  %v385_v40 = vld [vmem:[%s9637_s6 + $0x58] sm:$0xff] }
 0x100   : > { %6550 = vmatpush1.bf16.msra.mxu0 %v6549_v63  ;;  %6709 = vmatpush3.bf16.msra.mxu1 %v6708_v59  ;;  %v9949_v59 = vand.u32 4294901760, %v7823_v11  ;;  %v9951_v63 = vand.u32 4294901760, %v7839_v29  ;;  %v9955_v11 = vand.u32 4294901760, %v7866_v49  ;;  %v9957_v29 = vand.u32 4294901760, %v7873_v60  ;;  %v9960_v49 = vld [vmem:[#allocation6_spill] sm:$0xff]  ;;  %v9963_v60 = vld [vmem:[#allocation15_spill] sm:$0xff] }
 0x101   : > { %6552 = vmatprep.subr.bf16.mxu0 %v6551_v2  ;;  %6710 = vmatprep.subr.bf16.mxu1 %v9861_v34  ;;  %v413_v2 = vlaneseq  ;;  %v1972_v45 = vand.u32 4294901760, %v385_v40 }
 0x102   : > { %1171 = vmatprep.mubr.f32.mxu0 %v9862_v4  ;;  %5541 = vmatprep.mubr.msk.f32.mxu1 %vm7552_vm0, %v9862_v4  ;;  %v6714_v62 = vpack.c.bf16 %v9949_v59, %v9948_v55  ;;  %v6559_v20 = vpack.c.bf16 %v9951_v63, %v9950_v9  ;;  %v6717_v6 = vpack.c.bf16 %v9955_v11, %v9954_v10  ;;  %v8767_v55 = vld [vmem:[%s9636_s5] sm:$0x7] }
 0x103   : > { %v6563_v53 = vpack.c.bf16 %v9957_v29, %v9956_v28  ;;  %v8747_v47 = vshrl.u32 %v413_v2, 7  ;;  %v386_v59 = vld [vmem:[%s9637_s6 + $0x60] sm:$0xff] }
 0x104   : > { %6554 = vmatpush1.bf16.msra.mxu0 %v6553_v33  ;;  %6712 = vmatpush3.bf16.msra.mxu1 %v6711_v50  ;;  %v1963_v33 = vand.u32 4294901760, %v382_v0  ;;  %v1975_v9 = vand.u32 4294901760, %v386_v59 }
 0x105   : > { %6556 = vmatprep.subr.bf16.mxu0 %v6555_v12  ;;  %6713 = vmatprep.subr.bf16.mxu1 %v9861_v34  ;;  %v1969_v12 = vand.u32 4294901760, %v384_v39  ;;  %v419_v46 = vsub.s32 1, %v8747_v47 }
 0x106   : > { %v8749_v50 = vpack.c.bf16 %v1966_v23, %v1963_v33 }
 0x108   : > { %6558 = vmatpush1.bf16.msra.mxu0 %v6557_v48  ;;  %6715 = vmatpush3.bf16.msra.mxu1 %v6714_v62  ;;  %v8762_v48 = vpack.c.bf16 %v1972_v45, %v1969_v12  ;;  %v387_v62 = vld [vmem:[%s9637_s6 + $0x68] sm:$0xff] }
 0x109   : > { %6560 = vmatprep.subr.bf16.mxu0 %v6559_v20  ;;  %6716 = vmatprep.subr.bf16.mxu1 %v9861_v34  ;;  %v1978_v63 = vand.u32 4294901760, %v387_v62  ;;  %v420_v20 = vrot.slane %v8767_v55, %v419_v46 }
 0x10b   : > { %v8780_v7 = vpack.c.bf16 %v1978_v63, %v1975_v9 }
 0x10c   : > { %6562 = vmatpush1.bf16.msra.mxu0 %v6561_v22  ;;  %6718 = vmatpush3.bf16.msra.mxu1 %v6717_v6  ;;  %v389_v22 = vld [vmem:[%s9637_s6 + $0x78] sm:$0xff]  ;;  %v1981_v6 = vand.u32 4294901760, %v388_v8 }
 0x10d   : > { %6564 = vmatprep.subr.bf16.mxu0 %v6563_v53  ;;  %6719 = vmatprep.subr.bf16.mxu1 %v9861_v34  ;;  %v1984_v28 = vand.u32 4294901760, %v389_v22 }
 0x10f   : > { %v8798_v42 = vpack.c.bf16 %v1984_v28, %v1981_v6 }
 0x110   : > { %6566 = vmatpush1.bf16.msra.mxu0 %v9960_v49  ;;  %6721 = vmatpush3.bf16.msra.mxu1 %v9961_v13  ;;  %v8812_v49 = vsub.f32 %v383_v32, %v1966_v23  ;;  %v8838_v23 = vsub.f32 %v387_v62, %v1978_v63 }
 0x111   : > { %6568 = vmatprep.subr.bf16.mxu0 %v6567_v44  ;;  %6722 = vmatprep.subr.bf16.mxu1 %v9861_v34  ;;  %v8810_v44 = vsub.f32 %v382_v0, %v1963_v33  ;;  %v8836_v33 = vsub.f32 %v386_v59, %v1975_v9 }
 0x113   : > { %v9762_v13 = vand.u32 4294901760, %v8810_v44 }
 0x114   : > { %6570 = vmatpush1.bf16.msra.mxu0 %v8319_v21  ;;  %6724 = vmatpush3.bf16.msra.mxu1 %v8326_v24  ;;  %v9967_v21 = vld [vmem:[#allocation31_spill] sm:$0xff]  ;;  %v9968_v24 = vld [vmem:[#allocation32_spill] sm:$0xff] }
 0x115   : > { %6572 = vmatprep.subr.bf16.mxu0 %v9962_v51  ;;  %6725 = vmatprep.subr.bf16.mxu1 %v9861_v34  ;;  %v9761_v51 = vand.u32 4294901760, %v8812_v49 }
 0x118   : > { %6574 = vmatpush1.bf16.msra.mxu0 %v9963_v60  ;;  %6727 = vmatpush3.bf16.msra.mxu1 %v9964_v43  ;;  %v2089_v60 = vsub.f32 %v8810_v44, %v9762_v13  ;;  %v2096_v43 = vsub.f32 %v8812_v49, %v9761_v51 }
 0x119   : > { %6576 = vmatprep.subr.bf16.mxu0 %v9965_v16  ;;  %6728 = vmatprep.subr.bf16.mxu1 %v9861_v34  ;;  %v8822_v16 = vsub.f32 %v384_v39, %v1969_v12  ;;  %v9758_v12 = vand.u32 4294901760, %v8836_v33 }
 0x11c   : > { %6578 = vmatpush1.bf16.msra.mxu0 %v8366_v41  ;;  %6730 = vmatpush3.bf16.msra.mxu1 %v9966_v35  ;;  %v9969_v41 = vld [vmem:[#allocation33_spill] sm:$0xff]  ;;  %v8824_v35 = vsub.f32 %v385_v40, %v1972_v45  ;;  %v9757_v45 = vand.u32 4294901760, %v8838_v23 }
 0x11d   : > { %6580 = vmatprep.subr.bf16.mxu0 %v9908_v56  ;;  %6731 = vmatprep.subr.bf16.mxu1 %v9861_v34  ;;  %v9970_v56 = vld [vmem:[#allocation34_spill] sm:$0xff] }
 0x11e   : > { %v2124_v59 = vsub.f32 %v8838_v23, %v9757_v45 }
 0x11f   : > { %1173 = vmatmul.mubr.f32.vlgmr.msra.gmra.mrb[0].mxu0 %v8336_v15  ;;  %5542 = vmatmul.mubr.f32.vlgmr.msra.gmra.mrb[0].mxu1 %v8336_v15 }
 0x120   : > { %6582 = vmatpush1.bf16.msra.mxu0 %v9909_v18  ;;  %6733 = vmatpush3.bf16.msra.mxu1 %v9910_v3  ;;  %v8656_v18 = vld [vmem:[%s9637_s6] sm:$0xff]  ;;  %v8661_v3 = vld [vmem:[%s9637_s6 + $0x8] sm:$0xff] }
 0x121   : > { %6584 = vmatprep.subr.bf16.mxu0 %v9911_v36  ;;  %6734 = vmatprep.subr.bf16.mxu1 %v9861_v34  ;;  %v1939_v36 = vand.u32 4294901760, %v8656_v18 }
 0x122   : > { %1275 = vmatprep.mubr.f32.mxu0 %v9862_v4  ;;  %5576 = vmatprep.mubr.msk.f32.mxu1 %vm7552_vm0, %v9862_v4 }
 0x124   : > { %6586 = vmatpush1.bf16.msra.mxu0 %v9912_v57  ;;  %6736 = vmatpush3.bf16.msra.mxu1 %v9913_v58  ;;  %v1942_v57 = vand.u32 4294901760, %v8661_v3  ;;  %v8673_v58 = vld [vmem:[%s9637_s6 + $0x18] sm:$0xff] }
 0x125   : > { %6588 = vmatprep.subr.bf16.mxu0 %v9914_v61  ;;  %6737 = vmatprep.subr.bf16.mxu1 %v9861_v34 }
 0x128   : > { %6590 = vmatpush1.bf16.msra.mxu0 %v9915_v37  ;;  %6739 = vmatpush3.bf16.msra.mxu1 %v9916_v25  ;;  %v1948_v37 = vand.u32 4294901760, %v8673_v58  ;;  %v8680_v25 = vld [vmem:[%s9637_s6 + $0x20] sm:$0xff] }
 0x129   : > { %6592 = vmatprep.subr.bf16.mxu0 %v9917_v27  ;;  %6740 = vmatprep.subr.bf16.mxu1 %v9861_v34  ;;  %v8685_v27 = vld [vmem:[%s9637_s6 + $0x28] sm:$0xff] }
 0x12c   : > { %6594 = vmatpush1.bf16.msra.mxu0 %v9918_v5  ;;  %6742 = vmatpush3.bf16.msra.mxu1 %v9919_v1  ;;  %v8691_v5 = vpack.c.bf16 %v1942_v57, %v1939_v36 }
 0x12d   : > { %6596 = vmatprep.subr.bf16.mxu0 %v9920_v38  ;;  %6743 = vmatprep.subr.bf16.mxu1 %v9861_v34  ;;  %v1951_v38 = vand.u32 4294901760, %v8680_v25 }
 0x130   : > { %6598 = vmatpush1.bf16.msra.mxu0 %v9921_v31  ;;  %6745 = vmatpush3.bf16.msra.mxu1 %v9922_v52  ;;  %v1954_v31 = vand.u32 4294901760, %v8685_v27  ;;  %v8708_v52 = vld [vmem:[%s9637_s6 + $0x30] sm:$0xff] }
 0x131   : > { %6600 = vmatprep.subr.bf16.mxu0 %v9923_v19  ;;  %6746 = vmatprep.subr.bf16.mxu1 %v9861_v34  ;;  %v8713_v19 = vld [vmem:[%s9637_s6 + $0x38] sm:$0xff] }
 0x132   : > { %v8941_v51 = vsub.f32 %v8685_v27, %v1954_v31 }
 0x134   : > { %6602 = vmatpush1.bf16.msra.mxu0 %v9924_v54  ;;  %6748 = vmatpush3.bf16.msra.mxu1 %v9925_v14  ;;  %v8721_v54 = vpack.c.bf16 %v1954_v31, %v1951_v38  ;;  %v1957_v14 = vand.u32 4294901760, %v8708_v52 }
 0x135   : > { %6604 = vmatprep.subr.bf16.mxu0 %v9967_v21  ;;  %6749 = vmatprep.subr.bf16.mxu1 %v9861_v34  ;;  %v2090_v21 = vand.u32 4294901760, %v2089_v60  ;;  %v2125_v60 = vand.u32 4294901760, %v2124_v59  ;;  %v8891_v59 = vsub.f32 %v8661_v3, %v1942_v57 }
 0x138   : > { %6606 = vmatpush1.bf16.msra.mxu0 %v9968_v24  ;;  %6751 = vmatpush3.bf16.msra.mxu1 %v9969_v41  ;;  %v2097_v24 = vand.u32 4294901760, %v2096_v43  ;;  %v9760_v41 = vand.u32 4294901760, %v8822_v16 }
 0x139   : > { %6608 = vmatprep.subr.bf16.mxu0 %v9970_v56  ;;  %6752 = vmatprep.subr.bf16.mxu1 %v9861_v34  ;;  %v9759_v56 = vand.u32 4294901760, %v8824_v35 }
 0x13a   : > { %v8828_v2 = vpack.c.bf16 %v2097_v24, %v2090_v21  ;;  %v2103_v0 = vsub.f32 %v8822_v16, %v9760_v41  ;;  %v8868_v24 = vpack.c.bf16 %v8812_v49, %v8810_v44 }
 0x13b   : > { %v2110_v32 = vsub.f32 %v8824_v35, %v9759_v56 }
 0x13c   : > { %6610 = vmatpush1.bf16.msra.mxu0 %v9932_v26  ;;  %6754 = vmatpush3.bf16.msra.mxu1 %v9933_v17  ;;  %v1960_v26 = vand.u32 4294901760, %v8713_v19  ;;  %v2104_v39 = vand.u32 4294901760, %v2103_v0  ;;  %v8872_v0 = vpack.c.bf16 %v8824_v35, %v8822_v16 }
 0x13d   : > { %6755 = vmatprep.subr.bf16.mxu0 %v9861_v34  ;;  %6899 = vmatprep.subr.bf16.mxu1 %v9861_v34  ;;  %v2111_v40 = vand.u32 4294901760, %v2110_v32  ;;  %v8876_v32 = vpack.c.bf16 %v8838_v23, %v8836_v33 }
 0x13e   : > { %v8733_v17 = vpack.c.bf16 %v1960_v26, %v1957_v14 }
 0x13f   : > { %1277 = vmatmul.mubr.f32.vlgmr.msra.gmra.mrb[0].mxu0 %v8336_v15  ;;  %5577 = vmatmul.mubr.f32.vlgmr.msra.gmra.mrb[0].mxu1 %v8336_v15  ;;  %v8666_v15 = vld [vmem:[%s9637_s6 + $0x10] sm:$0xff]  ;;  %v8842_v46 = vpack.c.bf16 %v2111_v40, %v2104_v39  ;;  %v415_v40 = vsub.s32 0, %v8747_v47 }
 0x140   : > { %5611 = vmatprep.mubr.msk.f32.mxu0 %vm7552_vm0, %v9862_v4  ;;  %5821 = vmatprep.mubr.msk.f32.mxu1 %vm7552_vm0, %v9862_v4  ;;  %v1945_v61 = vand.u32 4294901760, %v8666_v15 }
 0x141   : > { %6757 = vmatpush3.bf16.msra.mxu0 %v8691_v5  ;;  %6901 = vmatpush3.bf16.msra.mxu1 %v8691_v5 }
 0x142   : > { %v8699_v1 = vpack.c.bf16 %v1948_v37, %v1945_v61  ;;  %6758 = vmatprep.subr.bf16.mxu0 %v9861_v34  ;;  %6902 = vmatprep.subr.bf16.mxu1 %v9861_v34 }
 0x145   : > { %6760 = vmatpush3.bf16.msra.mxu0 %v8699_v1  ;;  %6904 = vmatpush3.bf16.msra.mxu1 %v8699_v1 }
 0x146   : > { %6761 = vmatprep.subr.bf16.mxu0 %v9861_v34  ;;  %6905 = vmatprep.subr.bf16.mxu1 %v9861_v34 }
 0x149   : > { %6763 = vmatpush3.bf16.msra.mxu0 %v8721_v54  ;;  %6907 = vmatpush3.bf16.msra.mxu1 %v8721_v54 }
 0x14a   : > { %6764 = vmatprep.subr.bf16.mxu0 %v9861_v34  ;;  %6908 = vmatprep.subr.bf16.mxu1 %v9861_v34 }
 0x14d   : > { %6766 = vmatpush3.bf16.msra.mxu0 %v8733_v17  ;;  %6910 = vmatpush3.bf16.msra.mxu1 %v8733_v17 }
 0x14e   : > { %6767 = vmatprep.subr.bf16.mxu0 %v9861_v34  ;;  %6911 = vmatprep.subr.bf16.mxu1 %v9861_v34 }
 0x151   : > { %6769 = vmatpush3.bf16.msra.mxu0 %v8749_v50  ;;  %6913 = vmatpush3.bf16.msra.mxu1 %v8749_v50 }
 0x152   : > { %6770 = vmatprep.subr.bf16.mxu0 %v9861_v34  ;;  %6914 = vmatprep.subr.bf16.mxu1 %v9861_v34 }
 0x155   : > { %6772 = vmatpush3.bf16.msra.mxu0 %v8762_v48  ;;  %6916 = vmatpush3.bf16.msra.mxu1 %v8762_v48 }
 0x156   : > { %6773 = vmatprep.subr.bf16.mxu0 %v9861_v34  ;;  %6917 = vmatprep.subr.bf16.mxu1 %v9861_v34 }
 0x159   : > { %6775 = vmatpush3.bf16.msra.mxu0 %v8780_v7  ;;  %6919 = vmatpush3.bf16.msra.mxu1 %v8780_v7 }
 0x15a   : > { %6776 = vmatprep.subr.bf16.mxu0 %v9861_v34  ;;  %6920 = vmatprep.subr.bf16.mxu1 %v9861_v34 }
 0x15d   : > { %6778 = vmatpush3.bf16.msra.mxu0 %v8798_v42  ;;  %6922 = vmatpush3.bf16.msra.mxu1 %v8798_v42 }
 0x15e   : > { %6779 = vmatprep.subr.bf16.mxu0 %v9861_v34  ;;  %6923 = vmatprep.subr.bf16.mxu1 %v9861_v34 }
 0x212   : > { %v8788_v10 = vpop.f32.mrb[0].mxu0  ;;  %v8790_v11 = vpop.f32.mrb[0].mxu1 }
 0x213   : > { %v1280_v29 = vpop.f32.mrb[1].mxu0  ;;  %v5578_v53 = vpop.f32.mrb[1].mxu1 }
 0x214   : > { %v8796_v30 = vadd.f32 %v1280_v29, %v420_v20  ;;  %v2117_v20 = vsub.f32 %v8836_v33, %v9758_v12  ;;  %v8847_v29 = vsub.f32 %v388_v8, %v1981_v6  ;;  %v8849_v53 = vsub.f32 %v389_v22, %v1984_v28 }
 0x216   : > { %1928 = vrot.lane.b32.xlu0 %v8796_v30, %s7550_s18  ;;  %1925 = vrot.lane.b32.xlu1 %v8796_v30, %s7548_s13  ;;  %v2118_v62 = vand.u32 4294901760, %v2117_v20  ;;  %v9756_v9 = vand.u32 4294901760, %v8847_v29  ;;  %v9755_v63 = vand.u32 4294901760, %v8849_v53  ;;  %v8880_v39 = vpack.c.bf16 %v8849_v53, %v8847_v29 }
 0x217   : > { %v8886_v20 = vsub.f32 %v8656_v18, %v1939_v36  ;;  %v8904_v18 = vsub.f32 %v8673_v58, %v1948_v37 }
 0x218   : > { %v2131_v43 = vsub.f32 %v8847_v29, %v9756_v9  ;;  %v2138_v8 = vsub.f32 %v8849_v53, %v9755_v63  ;;  %v8862_v22 = vpack.c.bf16 %v2125_v60, %v2118_v62  ;;  %v416_v62 = vrot.slane %v8767_v55, %v415_v40 }
 0x219   : > { %v2032_v60 = vand.u32 4294901760, %v8886_v20  ;;  %v2053_v40 = vand.u32 4294901760, %v8904_v18 }
 0x21a   : > { %1931 = vrot.lane.b32.xlu1 %v8796_v30, %s7549_s23  ;;  %v2132_v6 = vand.u32 4294901760, %v2131_v43  ;;  %v2139_v28 = vand.u32 4294901760, %v2138_v8  ;;  %v2039_v43 = vand.u32 4294901760, %v8891_v59  ;;  %v8899_v8 = vsub.f32 %v8666_v15, %v1945_v61 }
 0x21b   : > { %v7331_v57 = vadd.f32 %v8788_v10, %v416_v62  ;;  %v2033_v55 = vsub.f32 %v8886_v20, %v2032_v60  ;;  %v8922_v10 = vsub.f32 %v8680_v25, %v1951_v38  ;;  %v2054_v27 = vsub.f32 %v8904_v18, %v2053_v40 }
 0x21c   : > { %v8864_v21 = vpack.c.bf16 %v2139_v28, %v2132_v6  ;;  %v2040_v15 = vsub.f32 %v8891_v59, %v2039_v43  ;;  %v2046_v61 = vand.u32 4294901760, %v8899_v8 }
 0x21d   : > { %v2060_v31 = vand.u32 4294901760, %v8922_v10 }
 0x288   : > { %v1926_v6 = vpop.permute.xlu1 %1925  ;;  %v1929_v36 = vpop.permute.xlu0 %1928 }
 0x289   : > { %v1934_v3 = vsel %vm406_vm1, %v8796_v30, %v1926_v6  ;;  %v3869_v28 = vsel %vm406_vm1, %v1926_v6, %v1929_v36 }
 0x28a   : > { %v1935_v58 = vsel %vm408_vm2, %v1934_v3, %v1929_v36 }
 0x28c   : > { %v1932_v37 = vpop.permute.xlu1 %1931 }
 0x28d   : > { %v1936_v62 = vsel %vm410_vm3, %v1935_v58, %v1932_v37  ;;  %v2579_v63 = vsel %vm406_vm1, %v1932_v37, %v8796_v30  ;;  %v3224_v9 = vsel %vm406_vm1, %v1929_v36, %v1932_v37  ;;  %v3870_v45 = vsel %vm408_vm2, %v3869_v28, %v1932_v37 }
 0x28e   : > { %v1937_v12 = vmul.f32 %v7331_v57, %v1936_v62  ;;  %v2580_v3 = vsel %vm408_vm2, %v2579_v63, %v1926_v6  ;;  %v3225_v56 = vsel %vm408_vm2, %v3224_v9, %v8796_v30  ;;  %v3871_v41 = vsel %vm410_vm3, %v3870_v45, %v8796_v30 }
 0x28f   : > { %v2581_v25 = vsel %vm410_vm3, %v2580_v3, %v1929_v36  ;;  %v3226_v38 = vsel %vm410_vm3, %v3225_v56, %v1926_v6  ;;  %v8936_v58 = vmul.f32 %v7331_v57, %v3871_v41  ;;  %v2034_v9 = vand.u32 4294901760, %v2033_v55 }
 0x290   : > { %v8943_v28 = vand.u32 4294901760, %v1937_v12  ;;  %v2582_v63 = vmul.f32 %v7331_v57, %v2581_v25  ;;  %v8945_v37 = vmul.f32 %v7331_v57, %v3226_v38  ;;  %v2041_v62 = vand.u32 4294901760, %v2040_v15 }
 0x291   : > { %v2047_v41 = vsub.f32 %v8899_v8, %v2046_v61  ;;  %v9763_v56 = vand.u32 4294901760, %v8941_v51  ;;  %v8963_v6 = vsub.f32 %v8708_v52, %v1957_v14  ;;  %v2055_v14 = vand.u32 4294901760, %v2054_v27 }
 0x292   : > { %v8948_v30 = vsub.f32 %v1937_v12, %v8943_v28  ;;  %v8950_v45 = vand.u32 4294901760, %v2582_v63  ;;  %v8968_v12 = vsub.f32 %v8713_v19, %v1960_v26  ;;  %v8974_v55 = vpack.c.bf16 %v2041_v62, %v2034_v9 }
 0x293   : > { %v2048_v52 = vand.u32 4294901760, %v2047_v41  ;;  %v2061_v19 = vsub.f32 %v8922_v10, %v2060_v31  ;;  %v2068_v26 = vsub.f32 %v8941_v51, %v9763_v56  ;;  %v2074_v25 = vand.u32 4294901760, %v8963_v6 }
 0x294   : > { %v2021_v36 = vand.u32 4294901760, %v8948_v30  ;;  %v8972_v57 = vsub.f32 %v2582_v63, %v8950_v45  ;;  %v2081_v38 = vand.u32 4294901760, %v8968_v12 }
 0x295   : > { %v8991_v41 = vpack.c.bf16 %v2055_v14, %v2048_v52  ;;  %v2062_v27 = vand.u32 4294901760, %v2061_v19  ;;  %v2069_v13 = vand.u32 4294901760, %v2068_v26  ;;  %v2075_v56 = vsub.f32 %v8963_v6, %v2074_v25 }
 0x296   : > { %v2022_v15 = vsub.f32 %v8948_v30, %v2021_v36  ;;  %v2666_v3 = vand.u32 4294901760, %v8972_v57 }
 0x297   : > { %v9008_v52 = vpack.c.bf16 %v2069_v13, %v2062_v27  ;;  %v2076_v14 = vand.u32 4294901760, %v2075_v56  ;;  %v9038_v13 = vpack.c.bf16 %v8891_v59, %v8886_v20  ;;  %v9047_v56 = vpack.c.bf16 %v8904_v18, %v8899_v8 }
 0x298   : > { %v2023_v63 = vand.u32 4294901760, %v2022_v15  ;;  %v2667_v9 = vsub.f32 %v8972_v57, %v2666_v3  ;;  %v2082_v15 = vsub.f32 %v8968_v12, %v2081_v38  ;;  %v9144_v20 = vpack.c.bf16 %v2053_v40, %v2046_v61 }
 0x299   : > { %v9971_v59 = vand.u32 4294901760, %v8941_v51  ;;  %v9973_v8 = vand.u32 4294901760, %v8812_v49  ;;  %v9974_v61 = vand.u32 4294901760, %v8822_v16  ;;  %v9975_v40 = vand.u32 4294901760, %v8824_v35 }
 0x29a   : > { %5612 = vmatmul.mubr.f32.vlgmr.msra.gmra.mrb[2].mxu0 %v2023_v63  ;;  %v2668_v62 = vand.u32 4294901760, %v2667_v9  ;;  %v2083_v19 = vand.u32 4294901760, %v2082_v15  ;;  %v9060_v63 = vpack.c.bf16 %v8941_v51, %v8922_v10  ;;  %v9068_v9 = vpack.c.bf16 %v8968_v12, %v8963_v6 }
 0x29b   : > { %6781 = vmatpush3.bf16.msra.mxu0 %v8974_v55  ;;  %5646 = vmatprep.mubr.msk.f32.mxu0 %vm7552_vm0, %v9862_v4  ;;  %v9972_v51 = vand.u32 4294901760, %v8810_v44  ;;  %v9190_v10 = vpack.c.bf16 %v9975_v40, %v9974_v61  ;;  %v9976_v44 = vand.u32 4294901760, %v8836_v33  ;;  %v9977_v49 = vand.u32 4294901760, %v8838_v23 }
 0x29c   : > { %5822 = vmatmul.mubr.f32.vlgmr.msra.gmra.mrb[2].mxu1 %v2668_v62  ;;  %6782 = vmatprep.subr.bf16.mxu0 %v9861_v34  ;;  %v9014_v26 = vpack.c.bf16 %v2083_v19, %v2076_v14  ;;  %v9132_v62 = vpack.c.bf16 %v2039_v43, %v2032_v60  ;;  %v9160_v60 = vpack.c.bf16 %v9971_v59, %v2060_v31  ;;  %v9978_v16 = vand.u32 4294901760, %v8847_v29 }
 0x29d   : > { %6925 = vmatpush3.bf16.msra.mxu1 %v8974_v55  ;;  %5856 = vmatprep.mubr.msk.f32.mxu1 %vm7552_vm0, %v9862_v4  ;;  %v9170_v43 = vpack.c.bf16 %v2081_v38, %v2074_v25  ;;  %v9180_v18 = vpack.c.bf16 %v9973_v8, %v9972_v51  ;;  %v9979_v35 = vand.u32 4294901760, %v8849_v53  ;;  %v9277_v33 = vand.u32 4294901760, %v8945_v37 }
 0x29e   : > { %6926 = vmatprep.subr.bf16.mxu1 %v9861_v34  ;;  %v9282_v23 = vand.u32 4294901760, %v8936_v58  ;;  %v7562_v61 = vmov 7   ;;  %v7563_v40 = vmov 10  }
 0x29f   : > { %6784 = vmatpush3.bf16.msra.mxu0 %v8991_v41  ;;  %v9210_v31 = vpack.c.bf16 %v9979_v35, %v9978_v16  ;;  %v9289_v29 = vsub.f32 %v8945_v37, %v9277_v33  ;;  %v7568_v16 = vmov 8   ;;  %v7569_v35 = vmov 15  }
 0x2a0   : > { %6785 = vmatprep.subr.bf16.mxu0 %v9861_v34  ;;  %v9294_v53 = vsub.f32 %v8936_v58, %v9282_v23 }
 0x2a1   : > { %6928 = vmatpush3.bf16.msra.mxu1 %v8991_v41 }
 0x2a2   : > { %6929 = vmatprep.subr.bf16.mxu1 %v9861_v34  ;;  %v3956_v37 = vand.u32 4294901760, %v9294_v53 }
 0x2a3   : > { %6787 = vmatpush3.bf16.msra.mxu0 %v9008_v52 }
 0x2a4   : > { %6788 = vmatprep.subr.bf16.mxu0 %v9861_v34 }
 0x2a5   : > { %6931 = vmatpush3.bf16.msra.mxu1 %v9008_v52 }
 0x2a6   : > { %6932 = vmatprep.subr.bf16.mxu1 %v9861_v34 }
 0x2a7   : > { %6790 = vmatpush3.bf16.msra.mxu0 %v9014_v26 }
 0x2a8   : > { %6791 = vmatprep.subr.bf16.mxu0 %v9861_v34 }
 0x2a9   : > { %6934 = vmatpush3.bf16.msra.mxu1 %v9014_v26 }
 0x2aa   : > { %6935 = vmatprep.subr.bf16.mxu1 %v9861_v34 }
 0x2ab   : > { %6793 = vmatpush3.bf16.msra.mxu0 %v8828_v2 }
 0x2ac   : > { %6794 = vmatprep.subr.bf16.mxu0 %v9861_v34 }
 0x2ad   : > { %6937 = vmatpush3.bf16.msra.mxu1 %v8828_v2 }
 0x2ae   : > { %6938 = vmatprep.subr.bf16.mxu1 %v9861_v34 }
 0x2af   : > { %6796 = vmatpush3.bf16.msra.mxu0 %v8842_v46 }
 0x2b0   : > { %6797 = vmatprep.subr.bf16.mxu0 %v9861_v34 }
 0x2b1   : > { %6940 = vmatpush3.bf16.msra.mxu1 %v8842_v46 }
 0x2b2   : > { %6941 = vmatprep.subr.bf16.mxu1 %v9861_v34 }
 0x2b3   : > { %6799 = vmatpush3.bf16.msra.mxu0 %v8862_v22 }
 0x2b4   : > { %6800 = vmatprep.subr.bf16.mxu0 %v9861_v34 }
 0x2b5   : > { %6943 = vmatpush3.bf16.msra.mxu1 %v8862_v22 }
 0x2b6   : > { %6944 = vmatprep.subr.bf16.mxu1 %v9861_v34 }
 0x2b7   : > { %6802 = vmatpush3.bf16.msra.mxu0 %v8864_v21 }
 0x2b8   : > { %6803 = vmatprep.subr.bf16.mxu0 %v9861_v34 }
 0x2b9   : > { %6946 = vmatpush3.bf16.msra.mxu1 %v8864_v21 }
 0x2ba   : > { %5647 = vmatmul.mubr.f32.vlgmr.msra.gmra.mrb[2].mxu0 %v8943_v28  ;;  %6947 = vmatprep.subr.bf16.mxu1 %v9861_v34 }
 0x2bb   : > { %6805 = vmatpush3.bf16.msra.mxu0 %v9038_v13  ;;  %5681 = vmatprep.mubr.msk.f32.mxu0 %vm7552_vm0, %v9862_v4 }
 0x2bc   : > { %5857 = vmatmul.mubr.f32.vlgmr.msra.gmra.mrb[2].mxu1 %v8950_v45  ;;  %6806 = vmatprep.subr.bf16.mxu0 %v9861_v34 }
 0x2bd   : > { %6949 = vmatpush3.bf16.msra.mxu1 %v9038_v13  ;;  %5891 = vmatprep.mubr.msk.f32.mxu1 %vm7552_vm0, %v9862_v4 }
 0x2be   : > { %6950 = vmatprep.subr.bf16.mxu1 %v9861_v34 }
 0x2bf   : > { %6808 = vmatpush3.bf16.msra.mxu0 %v9047_v56 }
 0x2c0   : > { %6809 = vmatprep.subr.bf16.mxu0 %v9861_v34 }
 0x2c1   : > { %6952 = vmatpush3.bf16.msra.mxu1 %v9047_v56 }
 0x2c2   : > { %6953 = vmatprep.subr.bf16.mxu1 %v9861_v34 }
 0x2c3   : > { %6811 = vmatpush3.bf16.msra.mxu0 %v9060_v63 }
 0x2c4   : > { %6812 = vmatprep.subr.bf16.mxu0 %v9861_v34 }
 0x2c5   : > { %6955 = vmatpush3.bf16.msra.mxu1 %v9060_v63 }
 0x2c6   : > { %6956 = vmatprep.subr.bf16.mxu1 %v9861_v34 }
 0x2c7   : > { %6814 = vmatpush3.bf16.msra.mxu0 %v9068_v9 }
 0x2c8   : > { %6815 = vmatprep.subr.bf16.mxu0 %v9861_v34 }
 0x2c9   : > { %6958 = vmatpush3.bf16.msra.mxu1 %v9068_v9 }
 0x2ca   : > { %6959 = vmatprep.subr.bf16.mxu1 %v9861_v34 }
 0x2cb   : > { %6817 = vmatpush3.bf16.msra.mxu0 %v8868_v24 }
 0x2cc   : > { %6818 = vmatprep.subr.bf16.mxu0 %v9861_v34 }
 0x2cd   : > { %6961 = vmatpush3.bf16.msra.mxu1 %v8868_v24 }
 0x2ce   : > { %6962 = vmatprep.subr.bf16.mxu1 %v9861_v34 }
 0x2cf   : > { %6820 = vmatpush3.bf16.msra.mxu0 %v8872_v0 }
 0x2d0   : > { %6821 = vmatprep.subr.bf16.mxu0 %v9861_v34 }
 0x2d1   : > { %6964 = vmatpush3.bf16.msra.mxu1 %v8872_v0 }
 0x2d2   : > { %6965 = vmatprep.subr.bf16.mxu1 %v9861_v34 }
 0x2d3   : > { %6823 = vmatpush3.bf16.msra.mxu0 %v8876_v32 }
 0x2d4   : > { %6824 = vmatprep.subr.bf16.mxu0 %v9861_v34 }
 0x2d5   : > { %6967 = vmatpush3.bf16.msra.mxu1 %v8876_v32 }
 0x2d6   : > { %6968 = vmatprep.subr.bf16.mxu1 %v9861_v34 }
 0x2d7   : > { %6826 = vmatpush3.bf16.msra.mxu0 %v8880_v39 }
 0x2d8   : > { %6827 = vmatprep.subr.bf16.mxu0 %v9861_v34 }
 0x2d9   : > { %6970 = vmatpush3.bf16.msra.mxu1 %v8880_v39 }
 0x2da   : > { %5682 = vmatmul.mubr.f32.vlgmr.msra.gmra.mrb[2].mxu0 %v8948_v30  ;;  %6971 = vmatprep.subr.bf16.mxu1 %v9861_v34  ;;  %v9200_v30 = vpack.c.bf16 %v9977_v49, %v9976_v44  ;;  %v7565_v44 = vmov 13   ;;  %v7566_v49 = vmov 4  }
 0x2db   : > { %6829 = vmatpush3.bf16.msra.mxu0 %v8691_v5  ;;  %5716 = vmatprep.mubr.msk.f32.mxu0 %vm7552_vm0, %v9862_v4 }
 0x2dc   : > { %5892 = vmatmul.mubr.f32.vlgmr.msra.gmra.mrb[2].mxu1 %v8972_v57  ;;  %6830 = vmatprep.subr.bf16.mxu0 %v9861_v34 }
 0x2dd   : > { %6973 = vmatpush3.bf16.msra.mxu1 %v8691_v5  ;;  %5926 = vmatprep.mubr.msk.f32.mxu1 %vm7552_vm0, %v9862_v4 }
 0x2de   : > { %6974 = vmatprep.subr.bf16.mxu1 %v9861_v34 }
 0x2df   : > { %6832 = vmatpush3.bf16.msra.mxu0 %v8699_v1 }
 0x2e0   : > { %6833 = vmatprep.subr.bf16.mxu0 %v9861_v34 }
 0x2e1   : > { %6976 = vmatpush3.bf16.msra.mxu1 %v8699_v1 }
 0x2e2   : > { %6977 = vmatprep.subr.bf16.mxu1 %v9861_v34 }
 0x2e3   : > { %6835 = vmatpush3.bf16.msra.mxu0 %v8721_v54 }
 0x2e4   : > { %6836 = vmatprep.subr.bf16.mxu0 %v9861_v34 }
 0x2e5   : > { %6979 = vmatpush3.bf16.msra.mxu1 %v8721_v54 }
 0x2e6   : > { %6980 = vmatprep.subr.bf16.mxu1 %v9861_v34 }
 0x2e7   : > { %6838 = vmatpush3.bf16.msra.mxu0 %v8733_v17 }
 0x2e8   : > { %6839 = vmatprep.subr.bf16.mxu0 %v9861_v34 }
 0x2e9   : > { %6982 = vmatpush3.bf16.msra.mxu1 %v8733_v17 }
 0x2ea   : > { %6983 = vmatprep.subr.bf16.mxu1 %v9861_v34 }
 0x2eb   : > { %6841 = vmatpush3.bf16.msra.mxu0 %v8749_v50 }
 0x2ec   : > { %6842 = vmatprep.subr.bf16.mxu0 %v9861_v34 }
 0x2ed   : > { %6985 = vmatpush3.bf16.msra.mxu1 %v8749_v50 }
 0x2ee   : > { %6986 = vmatprep.subr.bf16.mxu1 %v9861_v34 }
 0x2ef   : > { %6844 = vmatpush3.bf16.msra.mxu0 %v8762_v48 }
 0x2f0   : > { %6845 = vmatprep.subr.bf16.mxu0 %v9861_v34 }
 0x2f1   : > { %6988 = vmatpush3.bf16.msra.mxu1 %v8762_v48 }
 0x2f2   : > { %6989 = vmatprep.subr.bf16.mxu1 %v9861_v34 }
 0x2f3   : > { %6847 = vmatpush3.bf16.msra.mxu0 %v8780_v7 }
 0x2f4   : > { %6848 = vmatprep.subr.bf16.mxu0 %v9861_v34 }
 0x2f5   : > { %6991 = vmatpush3.bf16.msra.mxu1 %v8780_v7 }
 0x2f6   : > { %6992 = vmatprep.subr.bf16.mxu1 %v9861_v34 }
 0x2f7   : > { %6850 = vmatpush3.bf16.msra.mxu0 %v8798_v42 }
 0x2f8   : > { %6851 = vmatprep.subr.bf16.mxu0 %v9861_v34 }
 0x2f9   : > { %6994 = vmatpush3.bf16.msra.mxu1 %v8798_v42 }
 0x2fa   : > { %5717 = vmatmul.mubr.f32.vlgmr.msra.gmra.mrb[2].mxu0 %v2021_v36  ;;  %6995 = vmatprep.subr.bf16.mxu1 %v9861_v34 }
 0x2fb   : > { %6853 = vmatpush3.bf16.msra.mxu0 %v9132_v62  ;;  %5751 = vmatprep.mubr.msk.f32.mxu0 %vm7552_vm0, %v9862_v4 }
 0x2fc   : > { %5927 = vmatmul.mubr.f32.vlgmr.msra.gmra.mrb[2].mxu1 %v2666_v3  ;;  %6854 = vmatprep.subr.bf16.mxu0 %v9861_v34 }
 0x2fd   : > { %6997 = vmatpush3.bf16.msra.mxu1 %v9132_v62  ;;  %5961 = vmatprep.mubr.msk.f32.mxu1 %vm7552_vm0, %v9862_v4 }
 0x2fe   : > { %6998 = vmatprep.subr.bf16.mxu1 %v9861_v34 }
 0x2ff   : > { %6856 = vmatpush3.bf16.msra.mxu0 %v9144_v20 }
 0x300   : > { %6857 = vmatprep.subr.bf16.mxu0 %v9861_v34 }
 0x301   : > { %7000 = vmatpush3.bf16.msra.mxu1 %v9144_v20 }
 0x302   : > { %7001 = vmatprep.subr.bf16.mxu1 %v9861_v34 }
 0x303   : > { %6859 = vmatpush3.bf16.msra.mxu0 %v9160_v60 }
 0x304   : > { %6860 = vmatprep.subr.bf16.mxu0 %v9861_v34 }
 0x305   : > { %7003 = vmatpush3.bf16.msra.mxu1 %v9160_v60 }
 0x306   : > { %7004 = vmatprep.subr.bf16.mxu1 %v9861_v34 }
 0x307   : > { %6862 = vmatpush3.bf16.msra.mxu0 %v9170_v43 }
 0x308   : > { %6863 = vmatprep.subr.bf16.mxu0 %v9861_v34 }
 0x309   : > { %7006 = vmatpush3.bf16.msra.mxu1 %v9170_v43 }
 0x30a   : > { %7007 = vmatprep.subr.bf16.mxu1 %v9861_v34 }
 0x30b   : > { %6865 = vmatpush3.bf16.msra.mxu0 %v9180_v18 }
 0x30c   : > { %6866 = vmatprep.subr.bf16.mxu0 %v9861_v34 }
 0x30d   : > { %7009 = vmatpush3.bf16.msra.mxu1 %v9180_v18 }
 0x30e   : > { %7010 = vmatprep.subr.bf16.mxu1 %v9861_v34 }
 0x30f   : > { %6868 = vmatpush3.bf16.msra.mxu0 %v9190_v10 }
 0x310   : > { %6869 = vmatprep.subr.bf16.mxu0 %v9861_v34 }
 0x311   : > { %7012 = vmatpush3.bf16.msra.mxu1 %v9190_v10 }
 0x312   : > { %7013 = vmatprep.subr.bf16.mxu1 %v9861_v34 }
 0x313   : > { %6871 = vmatpush3.bf16.msra.mxu0 %v9200_v30 }
 0x314   : > { %6872 = vmatprep.subr.bf16.mxu0 %v9861_v34 }
 0x315   : > { %7015 = vmatpush3.bf16.msra.mxu1 %v9200_v30 }
 0x316   : > { %7016 = vmatprep.subr.bf16.mxu1 %v9861_v34 }
 0x317   : > { %6874 = vmatpush3.bf16.msra.mxu0 %v9210_v31 }
 0x318   : > { %6875 = vmatprep.subr.bf16.mxu0 %v9861_v34 }
 0x319   : > { %7018 = vmatpush3.bf16.msra.mxu1 %v9210_v31 }
 0x31a   : > { %5752 = vmatmul.mubr.f32.vlgmr.msra.gmra.mrb[2].mxu0 %v8943_v28  ;;  %7019 = vmatprep.subr.bf16.mxu1 %v9861_v34 }
 0x31b   : > { %6877 = vmatpush3.bf16.msra.mxu0 %v8691_v5  ;;  %5786 = vmatprep.mubr.msk.f32.mxu0 %vm7552_vm0, %v9862_v4 }
 0x31c   : > { %5962 = vmatmul.mubr.f32.vlgmr.msra.gmra.mrb[2].mxu1 %v8950_v45  ;;  %6878 = vmatprep.subr.bf16.mxu0 %v9861_v34 }
 0x31d   : > { %7021 = vmatpush3.bf16.msra.mxu1 %v8691_v5  ;;  %5996 = vmatprep.mubr.msk.f32.mxu1 %vm7552_vm0, %v9862_v4 }
 0x31e   : > { %7022 = vmatprep.subr.bf16.mxu1 %v9861_v34 }
 0x31f   : > { %6880 = vmatpush3.bf16.msra.mxu0 %v8699_v1 }
 0x320   : > { %6881 = vmatprep.subr.bf16.mxu0 %v9861_v34 }
 0x321   : > { %7024 = vmatpush3.bf16.msra.mxu1 %v8699_v1 }
 0x322   : > { %7025 = vmatprep.subr.bf16.mxu1 %v9861_v34 }
 0x323   : > { %6883 = vmatpush3.bf16.msra.mxu0 %v8721_v54 }
 0x324   : > { %6884 = vmatprep.subr.bf16.mxu0 %v9861_v34 }
 0x325   : > { %7027 = vmatpush3.bf16.msra.mxu1 %v8721_v54 }
 0x326   : > { %7028 = vmatprep.subr.bf16.mxu1 %v9861_v34 }
 0x327   : > { %6886 = vmatpush3.bf16.msra.mxu0 %v8733_v17 }
 0x328   : > { %6887 = vmatprep.subr.bf16.mxu0 %v9861_v34 }
 0x329   : > { %7030 = vmatpush3.bf16.msra.mxu1 %v8733_v17 }
 0x32a   : > { %7031 = vmatprep.subr.bf16.mxu1 %v9861_v34 }
 0x32b   : > { %6889 = vmatpush3.bf16.msra.mxu0 %v8749_v50 }
 0x32c   : > { %6890 = vmatprep.subr.bf16.mxu0 %v9861_v34 }
 0x32d   : > { %7033 = vmatpush3.bf16.msra.mxu1 %v8749_v50 }
 0x32e   : > { %7034 = vmatprep.subr.bf16.mxu1 %v9861_v34 }
 0x32f   : > { %6892 = vmatpush3.bf16.msra.mxu0 %v8762_v48 }
 0x330   : > { %6893 = vmatprep.subr.bf16.mxu0 %v9861_v34 }
 0x331   : > { %7036 = vmatpush3.bf16.msra.mxu1 %v8762_v48 }
 0x332   : > { %7037 = vmatprep.subr.bf16.mxu1 %v9861_v34 }
 0x333   : > { %6895 = vmatpush3.bf16.msra.mxu0 %v8780_v7 }
 0x334   : > { %6896 = vmatprep.subr.bf16.mxu0 %v9861_v34 }
 0x335   : > { %7039 = vmatpush3.bf16.msra.mxu1 %v8780_v7 }
 0x336   : > { %7040 = vmatprep.subr.bf16.mxu1 %v9861_v34 }
 0x337   : > { %6898 = vmatpush3.bf16.msra.mxu0 %v8798_v42 }
 0x338   : > { %7043 = vmatprep.subr.bf16.mxu0 %v9861_v34 }
 0x339   : > { %7042 = vmatpush3.bf16.msra.mxu1 %v8798_v42 }
 0x33a   : > { %5787 = vmatmul.mubr.f32.vlgmr.msra.gmra.mrb[2].mxu0 %v8943_v28  ;;  %7187 = vmatprep.subr.bf16.mxu1 %v9861_v34  ;;  %v3311_v28 = vand.u32 4294901760, %v9289_v29 }
 0x33b   : > { %7045 = vmatpush3.bf16.msra.mxu0 %v8691_v5  ;;  %6031 = vmatprep.mubr.msk.f32.mxu0 %vm7552_vm0, %v9862_v4 }
 0x33c   : > { %5997 = vmatmul.mubr.f32.vlgmr.msra.gmra.mrb[2].mxu1 %v8950_v45  ;;  %7046 = vmatprep.subr.bf16.mxu0 %v9861_v34  ;;  %v3312_v58 = vsub.f32 %v9289_v29, %v3311_v28  ;;  %v3957_v45 = vsub.f32 %v9294_v53, %v3956_v37 }
 0x33d   : > { %7189 = vmatpush3.bf16.msra.mxu1 %v8691_v5  ;;  %6241 = vmatprep.mubr.msk.f32.mxu1 %vm7552_vm0, %v9862_v4 }
 0x33e   : > { %7190 = vmatprep.subr.bf16.mxu1 %v9861_v34  ;;  %v3313_v6 = vand.u32 4294901760, %v3312_v58  ;;  %v3958_v12 = vand.u32 4294901760, %v3957_v45 }
 0x33f   : > { %7048 = vmatpush3.bf16.msra.mxu0 %v8699_v1 }
 0x340   : > { %7049 = vmatprep.subr.bf16.mxu0 %v9861_v34 }
 0x341   : > { %7192 = vmatpush3.bf16.msra.mxu1 %v8699_v1 }
 0x342   : > { %7193 = vmatprep.subr.bf16.mxu1 %v9861_v34 }
 0x343   : > { %7051 = vmatpush3.bf16.msra.mxu0 %v8721_v54 }
 0x344   : > { %7052 = vmatprep.subr.bf16.mxu0 %v9861_v34 }
 0x345   : > { %7195 = vmatpush3.bf16.msra.mxu1 %v8721_v54 }
 0x346   : > { %7196 = vmatprep.subr.bf16.mxu1 %v9861_v34 }
 0x347   : > { %7054 = vmatpush3.bf16.msra.mxu0 %v8733_v17 }
 0x348   : > { %7055 = vmatprep.subr.bf16.mxu0 %v9861_v34 }
 0x349   : > { %7198 = vmatpush3.bf16.msra.mxu1 %v8733_v17 }
 0x34a   : > { %7199 = vmatprep.subr.bf16.mxu1 %v9861_v34 }
 0x34b   : > { %7057 = vmatpush3.bf16.msra.mxu0 %v8749_v50 }
 0x34c   : > { %7058 = vmatprep.subr.bf16.mxu0 %v9861_v34 }
 0x34d   : > { %7201 = vmatpush3.bf16.msra.mxu1 %v8749_v50 }
 0x34e   : > { %7202 = vmatprep.subr.bf16.mxu1 %v9861_v34 }
 0x34f   : > { %7060 = vmatpush3.bf16.msra.mxu0 %v8762_v48 }
 0x350   : > { %7061 = vmatprep.subr.bf16.mxu0 %v9861_v34 }
 0x351   : > { %7204 = vmatpush3.bf16.msra.mxu1 %v8762_v48 }
 0x352   : > { %7205 = vmatprep.subr.bf16.mxu1 %v9861_v34 }
 0x353   : > { %7063 = vmatpush3.bf16.msra.mxu0 %v8780_v7 }
 0x354   : > { %7064 = vmatprep.subr.bf16.mxu0 %v9861_v34 }
 0x355   : > { %7207 = vmatpush3.bf16.msra.mxu1 %v8780_v7 }
 0x356   : > { %7208 = vmatprep.subr.bf16.mxu1 %v9861_v34 }
 0x357   : > { %7066 = vmatpush3.bf16.msra.mxu0 %v8798_v42 }
 0x358   : > { %7067 = vmatprep.subr.bf16.mxu0 %v9861_v34 }
 0x359   : > { %7210 = vmatpush3.bf16.msra.mxu1 %v8798_v42 }
 0x35a   : > { %6032 = vmatmul.mubr.f32.vlgmr.msra.gmra.mrb[4].mxu0 %v3313_v6  ;;  %7211 = vmatprep.subr.bf16.mxu1 %v9861_v34 }
 0x35b   : > { %7069 = vmatpush3.bf16.msra.mxu0 %v8974_v55  ;;  %6066 = vmatprep.mubr.msk.f32.mxu0 %vm7552_vm0, %v9862_v4 }
 0x35c   : > { %6242 = vmatmul.mubr.f32.vlgmr.msra.gmra.mrb[4].mxu1 %v3958_v12  ;;  %7070 = vmatprep.subr.bf16.mxu0 %v9861_v34 }
 0x35d   : > { %7213 = vmatpush3.bf16.msra.mxu1 %v8974_v55  ;;  %6276 = vmatprep.mubr.msk.f32.mxu1 %vm7552_vm0, %v9862_v4 }
 0x35e   : > { %7214 = vmatprep.subr.bf16.mxu1 %v9861_v34 }
 0x35f   : > { %7072 = vmatpush3.bf16.msra.mxu0 %v8991_v41 }
 0x360   : > { %7073 = vmatprep.subr.bf16.mxu0 %v9861_v34 }
 0x361   : > { %7216 = vmatpush3.bf16.msra.mxu1 %v8991_v41 }
 0x362   : > { %7217 = vmatprep.subr.bf16.mxu1 %v9861_v34 }
 0x363   : > { %7075 = vmatpush3.bf16.msra.mxu0 %v9008_v52 }
 0x364   : > { %7076 = vmatprep.subr.bf16.mxu0 %v9861_v34 }
 0x365   : > { %7219 = vmatpush3.bf16.msra.mxu1 %v9008_v52 }
 0x366   : > { %7220 = vmatprep.subr.bf16.mxu1 %v9861_v34 }
 0x367   : > { %7078 = vmatpush3.bf16.msra.mxu0 %v9014_v26 }
 0x368   : > { %7079 = vmatprep.subr.bf16.mxu0 %v9861_v34 }
 0x369   : > { %7222 = vmatpush3.bf16.msra.mxu1 %v9014_v26 }
 0x36a   : > { %7223 = vmatprep.subr.bf16.mxu1 %v9861_v34 }
 0x36b   : > { %7081 = vmatpush3.bf16.msra.mxu0 %v8828_v2 }
 0x36c   : > { %7082 = vmatprep.subr.bf16.mxu0 %v9861_v34 }
 0x36d   : > { %7225 = vmatpush3.bf16.msra.mxu1 %v8828_v2 }
 0x36e   : > { %7226 = vmatprep.subr.bf16.mxu1 %v9861_v34 }
 0x36f   : > { %7084 = vmatpush3.bf16.msra.mxu0 %v8842_v46 }
 0x370   : > { %7085 = vmatprep.subr.bf16.mxu0 %v9861_v34 }
 0x371   : > { %7228 = vmatpush3.bf16.msra.mxu1 %v8842_v46 }
 0x372   : > { %7229 = vmatprep.subr.bf16.mxu1 %v9861_v34 }
 0x373   : > { %7087 = vmatpush3.bf16.msra.mxu0 %v8862_v22 }
 0x374   : > { %7088 = vmatprep.subr.bf16.mxu0 %v9861_v34 }
 0x375   : > { %7231 = vmatpush3.bf16.msra.mxu1 %v8862_v22 }
 0x376   : > { %7232 = vmatprep.subr.bf16.mxu1 %v9861_v34 }
 0x377   : > { %7090 = vmatpush3.bf16.msra.mxu0 %v8864_v21 }
 0x378   : > { %7091 = vmatprep.subr.bf16.mxu0 %v9861_v34 }
 0x379   : > { %7234 = vmatpush3.bf16.msra.mxu1 %v8864_v21 }
 0x37a   : > { %6067 = vmatmul.mubr.f32.vlgmr.msra.gmra.mrb[4].mxu0 %v9277_v33  ;;  %7235 = vmatprep.subr.bf16.mxu1 %v9861_v34 }
 0x37b   : > { %7093 = vmatpush3.bf16.msra.mxu0 %v9038_v13  ;;  %6101 = vmatprep.mubr.msk.f32.mxu0 %vm7552_vm0, %v9862_v4 }
 0x37c   : > { %6277 = vmatmul.mubr.f32.vlgmr.msra.gmra.mrb[4].mxu1 %v9282_v23  ;;  %7094 = vmatprep.subr.bf16.mxu0 %v9861_v34 }
 0x37d   : > { %7237 = vmatpush3.bf16.msra.mxu1 %v9038_v13  ;;  %6311 = vmatprep.mubr.msk.f32.mxu1 %vm7552_vm0, %v9862_v4 }
 0x37e   : > { %7238 = vmatprep.subr.bf16.mxu1 %v9861_v34 }
 0x37f   : > { %7096 = vmatpush3.bf16.msra.mxu0 %v9047_v56 }
 0x380   : > { %7097 = vmatprep.subr.bf16.mxu0 %v9861_v34 }
 0x381   : > { %7240 = vmatpush3.bf16.msra.mxu1 %v9047_v56  ;;  %v7559_v56 = vmov 6  }
 0x382   : > { %7241 = vmatprep.subr.bf16.mxu1 %v9861_v34  ;;  %7462 = vset.pattern.permute.xlu1 %v7559_v56 }
 0x383   : > { %7099 = vmatpush3.bf16.msra.mxu0 %v9060_v63 }
 0x384   : > { %7100 = vmatprep.subr.bf16.mxu0 %v9861_v34 }
 0x385   : > { %7243 = vmatpush3.bf16.msra.mxu1 %v9060_v63  ;;  %v7560_v63 = vmov 5  }
 0x386   : > { %7244 = vmatprep.subr.bf16.mxu1 %v9861_v34  ;;  %7461 = vset.pattern.permute.xlu0 %v7560_v63 }
 0x387   : > { %7102 = vmatpush3.bf16.msra.mxu0 %v9068_v9 }
 0x388   : > { %7103 = vmatprep.subr.bf16.mxu0 %v9861_v34 }
 0x389   : > { %7246 = vmatpush3.bf16.msra.mxu1 %v9068_v9 }
 0x38a   : > { %7247 = vmatprep.subr.bf16.mxu1 %v9861_v34 }
 0x38b   : > { %7105 = vmatpush3.bf16.msra.mxu0 %v8868_v24 }
 0x38c   : > { %7106 = vmatprep.subr.bf16.mxu0 %v9861_v34 }
 0x38d   : > { %7249 = vmatpush3.bf16.msra.mxu1 %v8868_v24 }
 0x38e   : > { %7250 = vmatprep.subr.bf16.mxu1 %v9861_v34 }
 0x38f   : > { %7108 = vmatpush3.bf16.msra.mxu0 %v8872_v0 }
 0x390   : > { %7109 = vmatprep.subr.bf16.mxu0 %v9861_v34 }
 0x391   : > { %7252 = vmatpush3.bf16.msra.mxu1 %v8872_v0 }
 0x392   : > { %7253 = vmatprep.subr.bf16.mxu1 %v9861_v34 }
 0x393   : > { %7111 = vmatpush3.bf16.msra.mxu0 %v8876_v32 }
 0x394   : > { %7112 = vmatprep.subr.bf16.mxu0 %v9861_v34 }
 0x395   : > { %7255 = vmatpush3.bf16.msra.mxu1 %v8876_v32 }
 0x396   : > { %7256 = vmatprep.subr.bf16.mxu1 %v9861_v34 }
 0x397   : > { %7114 = vmatpush3.bf16.msra.mxu0 %v8880_v39 }
 0x398   : > { %7115 = vmatprep.subr.bf16.mxu0 %v9861_v34 }
 0x399   : > { %7258 = vmatpush3.bf16.msra.mxu1 %v8880_v39 }
 0x39a   : > { %6102 = vmatmul.mubr.f32.vlgmr.msra.gmra.mrb[4].mxu0 %v9289_v29  ;;  %7259 = vmatprep.subr.bf16.mxu1 %v9861_v34  ;;  %v7573_v29 = vmov 12  }
 0x39b   : > { %7117 = vmatpush3.bf16.msra.mxu0 %v8691_v5  ;;  %6136 = vmatprep.mubr.msk.f32.mxu0 %vm7552_vm0, %v9862_v4 }
 0x39c   : > { %6312 = vmatmul.mubr.f32.vlgmr.msra.gmra.mrb[4].mxu1 %v9294_v53  ;;  %7118 = vmatprep.subr.bf16.mxu0 %v9861_v34  ;;  %v7574_v53 = vmov 0  }
 0x39d   : > { %7261 = vmatpush3.bf16.msra.mxu1 %v8691_v5  ;;  %6346 = vmatprep.mubr.msk.f32.mxu1 %vm7552_vm0, %v9862_v4 }
 0x39e   : > { %7262 = vmatprep.subr.bf16.mxu1 %v9861_v34 }
 0x39f   : > { %7120 = vmatpush3.bf16.msra.mxu0 %v8699_v1 }
 0x3a0   : > { %7121 = vmatprep.subr.bf16.mxu0 %v9861_v34 }
 0x3a1   : > { %7264 = vmatpush3.bf16.msra.mxu1 %v8699_v1 }
 0x3a2   : > { %7265 = vmatprep.subr.bf16.mxu1 %v9861_v34 }
 0x3a3   : > { %7123 = vmatpush3.bf16.msra.mxu0 %v8721_v54 }
 0x3a4   : > { %7124 = vmatprep.subr.bf16.mxu0 %v9861_v34 }
 0x3a5   : > { %7267 = vmatpush3.bf16.msra.mxu1 %v8721_v54 }
 0x3a6   : > { %7268 = vmatprep.subr.bf16.mxu1 %v9861_v34 }
 0x3a7   : > { %7126 = vmatpush3.bf16.msra.mxu0 %v8733_v17 }
 0x3a8   : > { %7127 = vmatprep.subr.bf16.mxu0 %v9861_v34 }
 0x3a9   : > { %7270 = vmatpush3.bf16.msra.mxu1 %v8733_v17 }
 0x3aa   : > { %7271 = vmatprep.subr.bf16.mxu1 %v9861_v34 }
 0x3ab   : > { %7129 = vmatpush3.bf16.msra.mxu0 %v8749_v50 }
 0x3ac   : > { %7130 = vmatprep.subr.bf16.mxu0 %v9861_v34 }
 0x3ad   : > { %7273 = vmatpush3.bf16.msra.mxu1 %v8749_v50 }
 0x3ae   : > { %7274 = vmatprep.subr.bf16.mxu1 %v9861_v34 }
 0x3af   : > { %7132 = vmatpush3.bf16.msra.mxu0 %v8762_v48 }
 0x3b0   : > { %7133 = vmatprep.subr.bf16.mxu0 %v9861_v34 }
 0x3b1   : > { %7276 = vmatpush3.bf16.msra.mxu1 %v8762_v48 }
 0x3b2   : > { %7277 = vmatprep.subr.bf16.mxu1 %v9861_v34 }
 0x3b3   : > { %7135 = vmatpush3.bf16.msra.mxu0 %v8780_v7 }
 0x3b4   : > { %7136 = vmatprep.subr.bf16.mxu0 %v9861_v34 }
 0x3b5   : > { %7279 = vmatpush3.bf16.msra.mxu1 %v8780_v7 }
 0x3b6   : > { %7280 = vmatprep.subr.bf16.mxu1 %v9861_v34 }
 0x3b7   : > { %7138 = vmatpush3.bf16.msra.mxu0 %v8798_v42 }
 0x3b8   : > { %7139 = vmatprep.subr.bf16.mxu0 %v9861_v34 }
 0x3b9   : > { %7282 = vmatpush3.bf16.msra.mxu1 %v8798_v42 }
 0x3ba   : > { %6137 = vmatmul.mubr.f32.vlgmr.msra.gmra.mrb[4].mxu0 %v3311_v28  ;;  %7283 = vmatprep.subr.bf16.mxu1 %v9861_v34  ;;  %v423_v28 = vsub.s32 2, %v8747_v47 }
 0x3bb   : > { %7141 = vmatpush3.bf16.msra.mxu0 %v9132_v62  ;;  %6171 = vmatprep.mubr.msk.f32.mxu0 %vm7552_vm0, %v9862_v4 }
 0x3bc   : > { %6347 = vmatmul.mubr.f32.vlgmr.msra.gmra.mrb[4].mxu1 %v3956_v37  ;;  %7142 = vmatprep.subr.bf16.mxu0 %v9861_v34  ;;  %v7482_v37 = vld [vmem:[%s9636_s5] sm:$0x7] }
 0x3bd   : > { %7285 = vmatpush3.bf16.msra.mxu1 %v9132_v62  ;;  %6381 = vmatprep.mubr.msk.f32.mxu1 %vm7552_vm0, %v9862_v4  ;;  %v424_v58 = vrot.slane %v7482_v37, %v423_v28 }
 0x3be   : > { %7286 = vmatprep.subr.bf16.mxu1 %v9861_v34 }
 0x3bf   : > { %7144 = vmatpush3.bf16.msra.mxu0 %v9144_v20  ;;  %v9547_v45 = vadd.f32 %v8790_v11, %v424_v58 }
 0x3c0   : > { %7145 = vmatprep.subr.bf16.mxu0 %v9861_v34 }
 0x3c1   : > { %7288 = vmatpush3.bf16.msra.mxu1 %v9144_v20 }
 0x3c2   : > { %7289 = vmatprep.subr.bf16.mxu1 %v9861_v34 }
 0x3c3   : > { %7147 = vmatpush3.bf16.msra.mxu0 %v9160_v60 }
 0x3c4   : > { %7148 = vmatprep.subr.bf16.mxu0 %v9861_v34 }
 0x3c5   : > { %7291 = vmatpush3.bf16.msra.mxu1 %v9160_v60 }
 0x3c6   : > { %7292 = vmatprep.subr.bf16.mxu1 %v9861_v34 }
 0x3c7   : > { %7150 = vmatpush3.bf16.msra.mxu0 %v9170_v43 }
 0x3c8   : > { %7151 = vmatprep.subr.bf16.mxu0 %v9861_v34 }
 0x3c9   : > { %7294 = vmatpush3.bf16.msra.mxu1 %v9170_v43 }
 0x3ca   : > { %7295 = vmatprep.subr.bf16.mxu1 %v9861_v34 }
 0x3cb   : > { %7153 = vmatpush3.bf16.msra.mxu0 %v9180_v18 }
 0x3cc   : > { %7154 = vmatprep.subr.bf16.mxu0 %v9861_v34 }
 0x3cd   : > { %7297 = vmatpush3.bf16.msra.mxu1 %v9180_v18  ;;  %v7561_v18 = vmov 9  }
 0x3ce   : > { %7298 = vmatprep.subr.bf16.mxu1 %v9861_v34 }
 0x3cf   : > { %7156 = vmatpush3.bf16.msra.mxu0 %v9190_v10 }
 0x3d0   : > { %7157 = vmatprep.subr.bf16.mxu0 %v9861_v34 }
 0x3d1   : > { %7300 = vmatpush3.bf16.msra.mxu1 %v9190_v10  ;;  %v7564_v10 = vmov 11  }
 0x3d2   : > { %7301 = vmatprep.subr.bf16.mxu1 %v9861_v34 }
 0x3d3   : > { %7159 = vmatpush3.bf16.msra.mxu0 %v9200_v30 }
 0x3d4   : > { %7160 = vmatprep.subr.bf16.mxu0 %v9861_v34 }
 0x3d5   : > { %7303 = vmatpush3.bf16.msra.mxu1 %v9200_v30  ;;  %v7567_v30 = vmov 14  }
 0x3d6   : > { %7304 = vmatprep.subr.bf16.mxu1 %v9861_v34 }
 0x3d7   : > { %7162 = vmatpush3.bf16.msra.mxu0 %v9210_v31 }
 0x3d8   : > { %7163 = vmatprep.subr.bf16.mxu0 %v9861_v34 }
 0x3d9   : > { %7306 = vmatpush3.bf16.msra.mxu1 %v9210_v31  ;;  %v7570_v31 = vmov 1  }
 0x3da   : > { %6172 = vmatmul.mubr.f32.vlgmr.msra.gmra.mrb[4].mxu0 %v9277_v33  ;;  %7307 = vmatprep.subr.bf16.mxu1 %v9861_v34 }
 0x3db   : > { %7165 = vmatpush3.bf16.msra.mxu0 %v8691_v5  ;;  %6206 = vmatprep.mubr.msk.f32.mxu0 %vm7552_vm0, %v9862_v4 }
 0x3dc   : > { %6382 = vmatmul.mubr.f32.vlgmr.msra.gmra.mrb[4].mxu1 %v9282_v23  ;;  %7166 = vmatprep.subr.bf16.mxu0 %v9861_v34 }
 0x3dd   : > { %7309 = vmatpush3.bf16.msra.mxu1 %v8691_v5  ;;  %6416 = vmatprep.mubr.msk.f32.mxu1 %vm7552_vm0, %v9862_v4 }
 0x3de   : > { %7310 = vmatprep.subr.bf16.mxu1 %v9861_v34 }
 0x3df   : > { %7168 = vmatpush3.bf16.msra.mxu0 %v8699_v1 }
 0x3e0   : > { %7169 = vmatprep.subr.bf16.mxu0 %v9861_v34 }
 0x3e1   : > { %7312 = vmatpush3.bf16.msra.mxu1 %v8699_v1 }
 0x3e2   : > { %7313 = vmatprep.subr.bf16.mxu1 %v9861_v34 }
 0x3e3   : > { %7171 = vmatpush3.bf16.msra.mxu0 %v8721_v54 }
 0x3e4   : > { %7172 = vmatprep.subr.bf16.mxu0 %v9861_v34 }
 0x3e5   : > { %7315 = vmatpush3.bf16.msra.mxu1 %v8721_v54 }
 0x3e6   : > { %7316 = vmatprep.subr.bf16.mxu1 %v9861_v34 }
 0x3e7   : > { %7174 = vmatpush3.bf16.msra.mxu0 %v8733_v17 }
 0x3e8   : > { %7175 = vmatprep.subr.bf16.mxu0 %v9861_v34 }
 0x3e9   : > { %7318 = vmatpush3.bf16.msra.mxu1 %v8733_v17 }
 0x3ea   : > { %7319 = vmatprep.subr.bf16.mxu1 %v9861_v34 }
 0x3eb   : > { %7177 = vmatpush3.bf16.msra.mxu0 %v8749_v50 }
 0x3ec   : > { %7178 = vmatprep.subr.bf16.mxu0 %v9861_v34 }
 0x3ed   : > { %7321 = vmatpush3.bf16.msra.mxu1 %v8749_v50 }
 0x3ee   : > { %7322 = vmatprep.subr.bf16.mxu1 %v9861_v34 }
 0x3ef   : > { %7180 = vmatpush3.bf16.msra.mxu0 %v8762_v48 }
 0x3f0   : > { %7181 = vmatprep.subr.bf16.mxu0 %v9861_v34 }
 0x3f1   : > { %7324 = vmatpush3.bf16.msra.mxu1 %v8762_v48 }
 0x3f2   : > { %7325 = vmatprep.subr.bf16.mxu1 %v9861_v34 }
 0x3f3   : > { %7183 = vmatpush3.bf16.msra.mxu0 %v8780_v7 }
 0x3f4   : > { %7184 = vmatprep.subr.bf16.mxu0 %v9861_v34 }
 0x3f5   : > { %7327 = vmatpush3.bf16.msra.mxu1 %v8780_v7 }
 0x3f6   : > { %7328 = vmatprep.subr.bf16.mxu1 %v9861_v34 }
 0x3f7   : > { %7186 = vmatpush3.bf16.msra.mxu0 %v8798_v42 }
 0x3f9   : > { %7330 = vmatpush3.bf16.msra.mxu1 %v8798_v42 }
 0x3fa   : > { %6207 = vmatmul.mubr.f32.vlgmr.msra.gmra.mrb[4].mxu0 %v9277_v33  ;;  %v7571_v33 = vmov 2  }
 0x3fc   : > { %6417 = vmatmul.mubr.f32.vlgmr.msra.gmra.mrb[4].mxu1 %v9282_v23  ;;  %v7572_v23 = vmov 3  }
 0x40d   : > { %v2575_v4 = vpop.f32.mrb[2].mxu0 }
 0x40e   : > { %v5788_v5 = vpop.f32.mrb[3].mxu0 }
 0x40f   : > { %v3220_v1 = vpop.f32.mrb[2].mxu1 }
 0x410   : > { %v4532_v54 = vmax.f32 %v2575_v4, %v3220_v1  ;;  %4515 = vrot.lane.b32.xlu0 %v3220_v1, %s7553_s9  ;;  %v5998_v17 = vpop.f32.mrb[3].mxu1 }
 0x482   : > { %v4516_v46 = vpop.permute.xlu0 %4515 }
 0x483   : > { %v4527_v32 = vsel %vm4526_vm4, %v2575_v4, %v4516_v46 }
 0x4cd   : > { %v3865_v50 = vpop.f32.mrb[4].mxu0 }
 0x4ce   : > { %v4533_v48 = vmax.f32 %v4532_v54, %v3865_v50  ;;  %4519 = vrot.lane.b32.xlu0 %v3865_v50, %s7554_s21  ;;  %v6208_v34 = vpop.f32.mrb[5].mxu0 }
 0x4cf   : > { %v4510_v7 = vpop.f32.mrb[4].mxu1 }
 0x4d0   : > { %v4534_v42 = vmax.f32 %v4533_v48, %v4510_v7  ;;  %v6418_v2 = vpop.f32.mrb[5].mxu1 }
 0x4d2   : > { %4523 = vrot.lane.b32.xlu0 %v4510_v7, %s7555_s14  ;;  %4536 = vrot.lane.b32.xlu1 %v4534_v42, %s7553_s9 }
 0x4d6   : > { %4539 = vrot.lane.b32.xlu1 %v4534_v42, %s7554_s21 }
 0x4da   : > { %4542 = vrot.lane.b32.xlu1 %v4534_v42, %s7555_s14 }
 0x540   : > { %v4520_v22 = vpop.permute.xlu0 %4519 }
 0x541   : > { %v4529_v36 = vsel %vm4528_vm5, %v4527_v32, %v4520_v22 }
 0x544   : > { %v4537_v21 = vpop.permute.xlu1 %4536  ;;  %v4524_v0 = vpop.permute.xlu0 %4523 }
 0x545   : > { %v4545_v39 = vsel %vm4526_vm4, %v4534_v42, %v4537_v21  ;;  %v4531_v3 = vsel %vm4530_vm6, %v4529_v36, %v4524_v0 }
 0x548   : > { %v4540_v24 = vpop.permute.xlu1 %4539 }
 0x549   : > { %v4546_v57 = vsel %vm4528_vm5, %v4545_v39, %v4540_v24 }
 0x54c   : > { %v4543_v55 = vpop.permute.xlu1 %4542 }
 0x54d   : > { %v4547_v25 = vsel %vm4530_vm6, %v4546_v57, %v4543_v55 }
 0x54e   : > { %v4548_v38 = vsub.f32 %v4531_v3, %v4547_v25 }
 0x550   : > { %v4549_v41 = vmul.f32 1.442695, %v4548_v38 }
 0x552   : > { %7478 = vpow2.f32 %v4549_v41 }
 0x55c   : > { %v7479_v27 = vpop.eup %7478 }
 0x55d   : > { %4556 = vrot.lane.b32.xlu1 %v7479_v27, %s7556_s15  ;;  %4552 = vrot.lane.b32.xlu0 %v7479_v27, %s7557_s17  ;;  %s7575_s15 = smov [#allocation2]  }
 0x55e   : > { %s7487_s17 = sshll.u32 %s7575_s15, 4  ;;  %s7488_s17 = int_to_ptr.vmem [resolvable:$false] %s7487_s17 }
 0x561   : > { %4560 = vrot.lane.b32.xlu0 %v7479_v27, %s7558_s19  ;;  %s7489_s19 = scalar_lea.vmem %s7488_s17, 256 }
 0x5cf   : > { %v4553_v15 = vpop.permute.xlu0 %4552  ;;  %v4557_v14 = vpop.permute.xlu1 %4556 }
 0x5d0   : > { %v4555_v52 = vadd.f32 %v7479_v27, %v4553_v15 }
 0x5d2   : > { %v4559_v19 = vadd.f32 %v4557_v14, %v4555_v52 }
 0x5d3   : > { %v4561_v26 = vpop.permute.xlu0 %4560 }
 0x5d4   : > { %v4563_v13 = vadd.f32 %v4561_v26, %v4559_v19 }
 0x5d6   : > { %7480 = vrcp.f32 %v4563_v13 }
 0x5e0   : > { %v7481_v9 = vpop.eup %7480 }
 0x5e1   : > { %4570 = vrot.lane.b32.xlu0 %v7481_v9, %s7554_s21  ;;  %4567 = vrot.lane.b32.xlu1 %v7481_v9, %s7553_s9 }
 0x5e5   : > { %4573 = vrot.lane.b32.xlu1 %v7481_v9, %s7555_s14 }
 0x653   : > { %v4568_v62 = vpop.permute.xlu1 %4567  ;;  %v4571_v20 = vpop.permute.xlu0 %4570 }
 0x654   : > { %v4576_v59 = vsel %vm4526_vm4, %v7481_v9, %v4568_v62 }
 0x655   : > { %v4577_v60 = vsel %vm4528_vm5, %v4576_v59, %v4571_v20 }
 0x657   : > { %v4574_v43 = vpop.permute.xlu1 %4573 }
 0x658   : > { %v4578_v51 = vsel %vm4530_vm6, %v4577_v60, %v4574_v43 }
 0x659   : > { %v9525_v8 = vmul.f32 %v7479_v27, %v4578_v51 }
 0x65b   : > { %4657 = vperm.xlu1 %7462, %v9525_v8   ;;  %4622 = vperm.xlu0 %7461, %v9525_v8  }
 0x65f   : > { %7463 = vset.pattern.permute.xlu1 %v7561_v18  ;;  %7464 = vset.pattern.permute.xlu0 %v7562_v61 }
 0x660   : > { %4632 = vperm.xlu1 %7463, %v9525_v8   ;;  %4692 = vperm.xlu0 %7464, %v9525_v8  }
 0x664   : > { %7465 = vset.pattern.permute.xlu1 %v7563_v40  ;;  %7467 = vset.pattern.permute.xlu0 %v7564_v10 }
 0x665   : > { %4667 = vperm.xlu1 %7465, %v9525_v8   ;;  %4702 = vperm.xlu0 %7467, %v9525_v8  }
 0x669   : > { %7466 = vset.pattern.permute.xlu1 %v7565_v44  ;;  %7470 = vset.pattern.permute.xlu0 %v7566_v49 }
 0x66a   : > { %4642 = vperm.xlu1 %7466, %v9525_v8   ;;  %4587 = vperm.xlu0 %7470, %v9525_v8  }
 0x66e   : > { %7468 = vset.pattern.permute.xlu1 %v7567_v30  ;;  %7473 = vset.pattern.permute.xlu0 %v7568_v16 }
 0x66f   : > { %4677 = vperm.xlu1 %7468, %v9525_v8   ;;  %4597 = vperm.xlu0 %7473, %v9525_v8  }
 0x673   : > { %7469 = vset.pattern.permute.xlu1 %v7569_v35  ;;  %7477 = vset.pattern.permute.xlu0 %v7569_v35 }
 0x674   : > { %4712 = vperm.xlu1 %7469, %v9525_v8  }
 0x678   : > { %7471 = vset.pattern.permute.xlu1 %v7570_v31 }
 0x679   : > { %4617 = vperm.xlu1 %7471, %v9525_v8  }
 0x67d   : > { %7472 = vset.pattern.permute.xlu1 %v7571_v33 }
 0x67e   : > { %4652 = vperm.xlu1 %7472, %v9525_v8  }
 0x682   : > { %7474 = vset.pattern.permute.xlu1 %v7572_v23 }
 0x683   : > { %4687 = vperm.xlu1 %7474, %v9525_v8  }
 0x687   : > { %7475 = vset.pattern.permute.xlu1 %v7573_v29 }
 0x688   : > { %4607 = vperm.xlu1 %7475, %v9525_v8  }
 0x68c   : > { %7476 = vset.pattern.permute.xlu1 %v7574_v53 }
 0x6da   : > { %v4658_v6 = vpop.permute.xlu1 %4657  ;;  %v4623_v12 = vpop.permute.xlu0 %4622 }
 0x6db   : > { %v4660_v4 = vmul.f32 %v9547_v45, %v4658_v6  ;;  %v4625_v5 = vmul.f32 %v9547_v45, %v4623_v12 }
 0x6dd   : > { %4662 = vrot.lane.b32.xlu1 %v4660_v4, %s7549_s23  ;;  %4627 = vrot.lane.b32.xlu0 %v4625_v5, %s7549_s23 }
 0x6df   : > { %v4633_v1 = vpop.permute.xlu1 %4632  ;;  %v4693_v47 = vpop.permute.xlu0 %4692 }
 0x6e0   : > { %v4635_v54 = vmul.f32 %v9547_v45, %v4633_v1  ;;  %v4695_v17 = vmul.f32 %v9547_v45, %v4693_v47 }
 0x6e2   : > { %4637 = vrot.lane.b32.xlu0 %v4635_v54, %s7550_s18  ;;  %4697 = vrot.lane.b32.xlu1 %v4695_v17, %s7549_s23 }
 0x6e4   : > { %v4668_v11 = vpop.permute.xlu1 %4667  ;;  %v4703_v48 = vpop.permute.xlu0 %4702 }
 0x6e5   : > { %v4670_v50 = vmul.f32 %v9547_v45, %v4668_v11  ;;  %v4705_v34 = vmul.f32 %v9547_v45, %v4703_v48 }
 0x6e7   : > { %4672 = vrot.lane.b32.xlu0 %v4670_v50, %s7550_s18 }
 0x6e9   : > { %v4643_v7 = vpop.permute.xlu1 %4642  ;;  %v4588_v2 = vpop.permute.xlu0 %4587 }
 0x6ea   : > { %v4645_v42 = vmul.f32 %v9547_v45, %v4643_v7  ;;  %v4590_v39 = vmul.f32 %v9547_v45, %v4588_v2 }
 0x6eb   : > { %4707 = vrot.lane.b32.xlu0 %v4705_v34, %s7550_s18 }
 0x6ec   : > { %4647 = vrot.lane.b32.xlu1 %v4645_v42, %s7548_s13 }
 0x6ee   : > { %v4678_v46 = vpop.permute.xlu1 %4677  ;;  %v4598_v24 = vpop.permute.xlu0 %4597 }
 0x6ef   : > { %v4680_v22 = vmul.f32 %v9547_v45, %v4678_v46  ;;  %v4600_v32 = vmul.f32 %v9547_v45, %v4598_v24 }
 0x6f1   : > { %4682 = vrot.lane.b32.xlu1 %v4680_v22, %s7548_s13 }
 0x6f3   : > { %v4713_v21 = vpop.permute.xlu1 %4712 }
 0x6f4   : > { %v4715_v0 = vmul.f32 %v9547_v45, %v4713_v21 }
 0x6f5   : > { %4582 = vperm.xlu1 %7476, %v9525_v8  }
 0x6f6   : > { %4717 = vrot.lane.b32.xlu0 %v4715_v0, %s7548_s13 }
 0x6f8   : > { %v4618_v36 = vpop.permute.xlu1 %4617 }
 0x6f9   : > { %4602 = vrot.lane.b32.xlu1 %v4600_v32, %s7550_s18  ;;  %v4620_v15 = vmul.f32 %v9547_v45, %v4618_v36 }
 0x6fa   : > { %4592 = vrot.lane.b32.xlu0 %v4590_v39, %s7549_s23 }
 0x6fd   : > { %v4653_v57 = vpop.permute.xlu1 %4652 }
 0x6fe   : > { %v4655_v26 = vmul.f32 %v9547_v45, %v4653_v57 }
 0x702   : > { %v4688_v55 = vpop.permute.xlu1 %4687 }
 0x703   : > { %v4690_v20 = vmul.f32 %v9547_v45, %v4688_v55 }
 0x707   : > { %v4608_v3 = vpop.permute.xlu1 %4607 }
 0x708   : > { %v4610_v25 = vmul.f32 %v9547_v45, %v4608_v3 }
 0x70a   : > { %4612 = vrot.lane.b32.xlu0 %v4610_v25, %s7548_s13 }
 0x74f   : > { %v4628_v38 = vpop.permute.xlu0 %4627  ;;  %v4663_v41 = vpop.permute.xlu1 %4662 }
 0x750   : > { %v4630_v14 = vadd.f32 %v4628_v38, %v4620_v15  ;;  %v4665_v9 = vadd.f32 %v4663_v41, %v4655_v26 }
 0x754   : > { %v4638_v27 = vpop.permute.xlu0 %4637  ;;  %v4698_v52 = vpop.permute.xlu1 %4697 }
 0x755   : > { %v4640_v19 = vadd.f32 %v4638_v27, %v4630_v14  ;;  %v4700_v51 = vadd.f32 %v4698_v52, %v4690_v20 }
 0x759   : > { %v4673_v13 = vpop.permute.xlu0 %4672 }
 0x75a   : > { %v4675_v62 = vadd.f32 %v4673_v13, %v4665_v9 }
 0x75d   : > { %v4708_v60 = vpop.permute.xlu0 %4707 }
 0x75e   : > { %v4648_v56 = vpop.permute.xlu1 %4647  ;;  %v4710_v8 = vadd.f32 %v4708_v60, %v4700_v51 }
 0x75f   : > { %v4650_v63 = vadd.f32 %v4648_v56, %v4640_v19 }
 0x761   : > { %4722 = vrot.lane.b32.xlu1 %v4650_v63, %s7548_s13  ;;  %s4850_s13 = sshll.u32 %s306_s29, 3 }
 0x762   : > { %s308_s8 = scalar_lea.vmem [#allocation2], %s4850_s13 }
 0x763   : > { %v4683_v59 = vpop.permute.xlu1 %4682  ;;  %s4751_s20 = sshll.u32 %s308_s8, 4  ;;  %s9590_s20 = int_to_ptr.vmem [resolvable:$true] %s4751_s20 }
 0x764   : > { %v4685_v43 = vadd.f32 %v4683_v59, %v4675_v62  ;;  %s7483_s14 = scalar_lea.vmem %s9590_s20, 128  ;;  %p7490_p0 = scmp.lt.s32.totalorder %s9590_s20, %s7488_s17 }
 0x765   : > { %p7484_p11 = scmp.ne.s32.totalorder %s9590_s20, %s7483_s14  ;;  %p7491_p1 = scmp.lt.s32.totalorder %s7489_s19, %s7483_s14 }
 0x766   : > { %4726 = vrot.lane.b32.xlu0 %v4685_v43, %s7550_s18  ;;  %s4856_s18 = sshll.u32 %s7637_s28, 7  ;;  %s4738_s28 = scalar_lea.sflag [#allocation3], %s306_s29 }
 0x767   : > { %s9588_s21 = scalar_lea.hbm %s9638_s7, %s4856_s18  ;;  %p7485_p12 = pnand %p7484_p11, %p7654_p5 }
 0x768   : > { %v4718_v18 = vpop.permute.xlu0 %4717  ;;  %p7492_p2 = por %p7491_p1, %p7490_p0 }
 0x769   : > { %v4720_v61 = vadd.f32 %v4718_v18, %v4710_v8  ;;  %p7486_p13 = pneg %p7485_p12 }
 0x76b   : > { %4730 = vrot.lane.b32.xlu1 %v4720_v61, %s7549_s23  ;;  %p7493_p3 = pnand %p7492_p2, %p7486_p13 }
 0x76c   : > { %v4593_v44 = vpop.permute.xlu0 %4592 }
 0x774   : > { %v4583_v40 = vpop.permute.xlu1 %4582 }
 0x775   : > { %v4585_v10 = vmul.f32 %v9547_v45, %v4583_v40 }
 0x777   : > { %v4595_v49 = vadd.f32 %v4593_v44, %v4585_v10 }
 0x778   : > { %v4603_v30 = vpop.permute.xlu1 %4602 }
 0x779   : > { %v4605_v35 = vadd.f32 %v4603_v30, %v4595_v49 }
 0x77c   : > { %v4613_v16 = vpop.permute.xlu0 %4612 }
 0x77d   : > { %v4615_v33 = vadd.f32 %v4613_v16, %v4605_v35 }
 0x7d3   : > { %v4723_v31 = vpop.permute.xlu1 %4722 }
 0x7d4   : > { %v4733_v29 = vsel %vm406_vm1, %v4615_v33, %v4723_v31 }
 0x7d8   : > { %v4727_v23 = vpop.permute.xlu0 %4726 }
 0x7d9   : > { %v4734_v53 = vsel %vm408_vm2, %v4733_v29, %v4727_v23 }
 0x7dd   : > { %v4731_v28 = vpop.permute.xlu1 %4730 }
 0x7de   : > { %v4735_v37 = vsel %vm410_vm3, %v4734_v53, %v4731_v28 }
 0x7df   : > { %4736 = vst [vmem:[%s308_s8] sm:$0xff] %v4735_v37 }
 0x7e0   : > { %7496 = shalt.err (!%p7493_p3)
}
 0x7e1   : > { %s7497_s22 = scalar_lea.hbm %s9588_s21, 128  ;;  %s7501_s13 = scalar_lea.hbm %s9638_s7, 256 }
 0x7e2   : > { %p7498_p4 = scmp.ne.s32.totalorder %s9588_s21, %s7497_s22  ;;  %p7502_p9 = scmp.lt.u32.totalorder %s9588_s21, %s9638_s7 }
 0x7e3   : > { %p7503_p10 = scmp.lt.u32.totalorder %s7501_s13, %s7497_s22  ;;  %p7505_p12 = scmp.lt.u32.totalorder %s7497_s22, %s9588_s21 }
 0x7e4   : > { %p7499_p7 = pnand %p7498_p4, %p7654_p5 }
 0x7e5   : > { %p7504_p11 = por %p7503_p10, %p7502_p9 }
 0x7e6   : > { %p7500_p8 = pneg %p7499_p7 }
 0x7e7   : > { %p7506_p13 = por %p7505_p12, %p7504_p11 }
 0x7e9   : > { %p7507_p0 = pnand %p7506_p13, %p7500_p8 }
 0x7eb   : > { %7510 = shalt.err (!%p7507_p0)
}
 0x7ec   : > { %7394 = dma.vmem_to_hbm [thread:$0]  (%p7654_p5), %s9590_s20, 128, %s9588_s21, %s4738_s28  }
 0x7ed PF: > { %p7400_p1 = scmp.ge.s32.totalorder %s7545_s27, 2  ;;  %s4763_s23 = sand.u32 1, %s7533_s24  }
 0x7ee   : > { %s4764_s9 = scalar_lea.sflag [#allocation3], %s4763_s23 }
 0x7ef   : > { %p7397_p2 = pnand %p7400_p1, %p7658_p6 }
 0x7f1   : > { %7528 = dma.done.wait (!%p7397_p2), %s4764_s9, 128  }
 0x7f2   : > { %7530 = vsyncadd (!%p7397_p2), %s4764_s9, 4294967168  ;;  %p17_p3 = scmp.ge.s32.totalorder %s7641_s30, 4   ;;  %s9980_s24 = smov %s7537_s25 }
 0x7f3   : > { %s9981_s25 = smov %s7541_s26  ;;  %s9982_s26 = smov %s7652_s10 }
 0x7f4   : > { %s9983_s27 = smov %s7641_s30  ;;  %19 = sbr.rel (!%p17_p3) target bundleno = 3 (0x3), region = 92 }
 0x7fb   :  { %4769 = vsyncpa [#allocation3], 1 }
 0x7fc   :  { %4771 = vsyncpa [#allocation3 + $0x1], 1 }

</bundles_post_ra>
